<compile_context>
chip_gen: v7x
topology: tpu7x:2x2x1
jax: 0.10.0
libtpu: 0.0.40
codegen_flags: <defaults>
</compile_context>

<pallas_src>
import jax
import jax.numpy as jnp
from jax.experimental import pallas as pl
from jax.experimental.pallas import tpu as pltpu

BERT_HIDDEN = 768          # bert-base hidden_size
RESNET_FEAT = 2048         # resnet50 fc.in_features
PROJ = 32                  # image_linear / txt_linear out_features
D_MODEL = 64               # TransformerEncoderLayer d_model
FF_DIM = 2048              # TransformerEncoderLayer default dim_feedforward
HEAD_HID = 128
N_CLASSES = 3
OUT_PAD = 128              # lane-dense padded output width
EPS = 1e-5                 # torch LayerNorm default eps
GRANULE = 16               # sublane granule covering bf16 packing (and f32's 8)
TB_CAP = 512               # max batch rows per grid step


def _round_up(x, m):
    return ((x + m - 1) // m) * m


def _layernorm(x, g, b):
    mu = jnp.mean(x, axis=-1, keepdims=True)
    var = jnp.mean((x - mu) ** 2, axis=-1, keepdims=True)
    return (x - mu) * jax.lax.rsqrt(var + EPS) * g + b


def fuse_kernel(img_ref, txt_ref,
                wimg_ref, wtxt_ref, bcomb_ref,
                wres_ref, bvo_ref,
                g1_ref, beta1_ref,
                wf1_ref, bf1_ref, wf2_ref, bf2_ref,
                g2_ref, beta2_ref,
                wh1_ref, bh1_ref, wh2_ref, bh2_ref,
                out_ref):
    f32 = jnp.float32
    bf16 = jnp.bfloat16

    img = img_ref[...].astype(bf16)                           # (TB, 2048)
    txt = txt_ref[...].astype(bf16)                           # (TB, 768)

    # [image_linear | txt_linear] + concat: two matmuls writing disjoint
    # column halves (image -> 0:32, txt -> 32:64) of one (TB, 64) result,
    # shared bias + ReLU.  Matches torch.cat((image, txt), dim=2).
    x = jnp.maximum(
        jnp.dot(img, wimg_ref[...], preferred_element_type=f32)
        + jnp.dot(txt, wtxt_ref[...], preferred_element_type=f32)
        + bcomb_ref[...], 0.0)                                # (TB, 64) f32

    # --- TransformerEncoderLayer (post-norm, relu, dropout = identity) ---
    # seq_len == 1: softmax over one key == 1 => attention out == V.
    # Offline fold: W_res = I + Wv@Wo, b_vo = bv@Wo + bo, so
    #   x + self_attn(x) == x @ W_res + b_vo   (exact).
    x1 = _layernorm(
        jnp.dot(x.astype(bf16), wres_ref[...],
                preferred_element_type=f32) + bvo_ref[...],
        g1_ref[...], beta1_ref[...])                          # norm1, f32

    ff = jnp.maximum(
        jnp.dot(x1.astype(bf16), wf1_ref[...],
                preferred_element_type=f32) + bf1_ref[...],
        0.0).astype(bf16)                                     # (TB, 2048) bf16
    ff = jnp.dot(ff, wf2_ref[...],
                 preferred_element_type=f32) + bf2_ref[...]   # (TB, 64) f32

    x2 = _layernorm(x1 + ff, g2_ref[...], beta2_ref[...])     # norm2, f32

    # classifier head: Dropout(id) -> Linear(64,128) -> ReLU -> Dropout(id)
    #                  -> Linear(128, 3 zero-padded to 128 lanes)
    h = jnp.maximum(
        jnp.dot(x2.astype(bf16), wh1_ref[...],
                preferred_element_type=f32) + bh1_ref[...], 0.0)
    out_ref[...] = jnp.dot(h.astype(bf16), wh2_ref[...],
                           preferred_element_type=f32) + bh2_ref[...]


# params as fed to the kernel (fused / sliced / folded / padded / bf16-cast)
PREP_ORDER = ["wimg64", "wtxt64", "bcomb", "wres", "bvo",
              "g1", "beta1",
              "wf1", "bf1", "wf2", "bf2",
              "g2", "beta2",
              "wh1", "bh1", "wh2p", "bh2p"]


def init_params(key):
    """PyTorch-equivalent parameter set (full QKV, separate projections)."""
    ks = jax.random.split(key, 8)

    def w(k, shape):
        return 0.02 * jax.random.normal(k, shape, jnp.float32)

    def zeros(n):
        return jnp.zeros((1, n), jnp.float32)

    def ones(n):
        return jnp.ones((1, n), jnp.float32)

    return dict(
        wtxt=w(ks[0], (BERT_HIDDEN, PROJ)),     btxt=zeros(PROJ),
        wimg=w(ks[1], (RESNET_FEAT, PROJ)),     bimg=zeros(PROJ),
        wqkv=w(ks[2], (D_MODEL, 3 * D_MODEL)),  bqkv=zeros(3 * D_MODEL),
        wo=w(ks[3], (D_MODEL, D_MODEL)),        bo=zeros(D_MODEL),
        g1=ones(D_MODEL),                       beta1=zeros(D_MODEL),
        wf1=w(ks[4], (D_MODEL, FF_DIM)),        bf1=zeros(FF_DIM),
        wf2=w(ks[5], (FF_DIM, D_MODEL)),        bf2=zeros(D_MODEL),
        g2=ones(D_MODEL),                       beta2=zeros(D_MODEL),
        wh1=w(ks[6], (D_MODEL, HEAD_HID)),      bh1=zeros(HEAD_HID),
        wh2=w(ks[7], (HEAD_HID, N_CLASSES)),    bh2=zeros(N_CLASSES),
    )


def prepare_params(params):
    """One-time fuse/slice/fold/pad/cast of the PyTorch-layout params."""
    f32, bf16 = jnp.float32, jnp.bfloat16

    # image projection -> cols 0:32, txt projection -> cols 32:64 of the 64-wide
    # fused feature (the other half of each weight is zero, so the two matmuls
    # write disjoint column ranges of the same accumulator).
    wimg64 = jnp.zeros((RESNET_FEAT, D_MODEL), f32).at[:, :PROJ].set(params["wimg"])
    wtxt64 = jnp.zeros((BERT_HIDDEN, D_MODEL), f32).at[:, PROJ:].set(params["wtxt"])
    bcomb = jnp.concatenate([params["bimg"], params["btxt"]], axis=-1)

    # seq_len==1 attention only needs the V slice of QKV; fold V proj, output
    # proj and the residual in f32, cast to bf16 once.
    wv = params["wqkv"][:, 2 * D_MODEL:]
    bv = params["bqkv"][:, 2 * D_MODEL:]
    wres = jnp.eye(D_MODEL, dtype=f32) + wv @ params["wo"]
    bvo = bv @ params["wo"] + params["bo"]

    # zero-pad the 3-class head to 128 lanes for an unmasked, lane-dense store
    wh2p = jnp.zeros((HEAD_HID, OUT_PAD), f32).at[:, :N_CLASSES].set(params["wh2"])
    bh2p = jnp.zeros((1, OUT_PAD), f32).at[:, :N_CLASSES].set(params["bh2"])

    return dict(
        wimg64=wimg64.astype(bf16),      wtxt64=wtxt64.astype(bf16),
        bcomb=bcomb.astype(f32),
        wres=wres.astype(bf16),          bvo=bvo.astype(f32),
        g1=params["g1"].astype(f32),     beta1=params["beta1"].astype(f32),
        wf1=params["wf1"].astype(bf16),  bf1=params["bf1"].astype(f32),
        wf2=params["wf2"].astype(bf16),  bf2=params["bf2"].astype(f32),
        g2=params["g2"].astype(f32),     beta2=params["beta2"].astype(f32),
        wh1=params["wh1"].astype(bf16),  bh1=params["bh1"].astype(f32),
        wh2p=wh2p.astype(bf16),          bh2p=bh2p.astype(f32),
    )


@jax.jit
def fuse_forward(txt_cls, img_feat, prep):
    B = txt_cls.shape[0]

    # Batch-tile selection:
    #  * multiple of the 16-row granule (covers bf16 sublane packing),
    #  * at least 2 grid steps whenever the padded batch allows it (v7x has
    #    two TensorCores; "parallel" semantics shards the grid across them),
    #  * capped at TB_CAP=512 rows per step (per-step overhead <~5-10% while
    #    VMEM stays well inside every generation's limit).
    B_ru = _round_up(B, GRANULE)
    if B_ru <= GRANULE:
        TB = GRANULE
    else:
        TB = min(TB_CAP, _round_up((B_ru + 1) // 2, GRANULE))
    B_pad = _round_up(B, TB)

    def pad_rows(a):
        return a if B_pad == B else jnp.pad(a, ((0, B_pad - B), (0, 0)))

    # features are passed straight through (f32), cast to bf16 inside the
    # kernel: no extra XLA-side concat/cast pass over the activation stream.
    img = pad_rows(img_feat)                                  # (B_pad, 2048)
    txt = pad_rows(txt_cls)                                   # (B_pad, 768)

    weight_args = [prep[k] for k in PREP_ORDER]

    def const_spec(arr):
        # weights: block index never changes -> DMA'd once, VMEM-resident
        return pl.BlockSpec(arr.shape, lambda i: (0, 0))

    out = pl.pallas_call(
        fuse_kernel,
        out_shape=jax.ShapeDtypeStruct((B_pad, OUT_PAD), jnp.float32),
        grid=(B_pad // TB,),
        in_specs=[pl.BlockSpec((TB, RESNET_FEAT), lambda i: (i, 0)),
                  pl.BlockSpec((TB, BERT_HIDDEN), lambda i: (i, 0))]
                 + [const_spec(a) for a in weight_args],
        out_specs=pl.BlockSpec((TB, OUT_PAD), lambda i: (i, 0)),
        compiler_params=pltpu.CompilerParams(
            dimension_semantics=("parallel",),
            vmem_limit_bytes=40 * 1024 * 1024),
    )(img, txt, *weight_args)

    # padded batch rows produce garbage (harmless) -> slice them off here.
    return out[:B, :N_CLASSES]


if __name__ == "__main__":
    key = jax.random.PRNGKey(0)
    kp, kt, ki = jax.random.split(key, 3)

    params = init_params(kp)
    prep = prepare_params(params)

    B = 2
    # Backbone outputs (see TODO(synk) above): BERT [CLS] hidden state and
    # ResNet50 avg-pooled features, generated deterministically here.
    txt_cls = jax.random.normal(kt, (B, BERT_HIDDEN), jnp.float32)
    img_feat = jax.random.normal(ki, (B, RESNET_FEAT), jnp.float32)

    out = fuse_forward(txt_cls, img_feat, prep)
    jax.block_until_ready(out)
    assert out.shape == (B, N_CLASSES) and out.dtype == jnp.float32
    print("KERNEL_OK")
</pallas_src>

<mosaic_0001>
module attributes {stable_mosaic.version = 11 : i64} {
  func.func @fuse_kernel(%arg0: i32, %arg1: memref<16x2048xf32, #tpu.memory_space<vmem>>, %arg2: memref<16x768xf32, #tpu.memory_space<vmem>>, %arg3: memref<2048x64xbf16, #tpu.memory_space<vmem>>, %arg4: memref<768x64xbf16, #tpu.memory_space<vmem>>, %arg5: memref<1x64xf32, #tpu.memory_space<vmem>>, %arg6: memref<64x64xbf16, #tpu.memory_space<vmem>>, %arg7: memref<1x64xf32, #tpu.memory_space<vmem>>, %arg8: memref<1x64xf32, #tpu.memory_space<vmem>>, %arg9: memref<1x64xf32, #tpu.memory_space<vmem>>, %arg10: memref<64x2048xbf16, #tpu.memory_space<vmem>>, %arg11: memref<1x2048xf32, #tpu.memory_space<vmem>>, %arg12: memref<2048x64xbf16, #tpu.memory_space<vmem>>, %arg13: memref<1x64xf32, #tpu.memory_space<vmem>>, %arg14: memref<1x64xf32, #tpu.memory_space<vmem>>, %arg15: memref<1x64xf32, #tpu.memory_space<vmem>>, %arg16: memref<64x128xbf16, #tpu.memory_space<vmem>>, %arg17: memref<1x128xf32, #tpu.memory_space<vmem>>, %arg18: memref<128x128xbf16, #tpu.memory_space<vmem>>, %arg19: memref<1x128xf32, #tpu.memory_space<vmem>>, %arg20: memref<16x128xf32, #tpu.memory_space<vmem>>) attributes {dimension_semantics = [#tpu.dimension_semantics<parallel>], iteration_bounds = array<i64: 1>, scalar_prefetch = 0 : i64, scratch_operands = 0 : i64, tpu.core_type = #tpu.core_type<tc>, window_params = [{transform_indices = @transform_0, window_bounds = array<i64: 16, 2048>}, {transform_indices = @transform_1, window_bounds = array<i64: 16, 768>}, {pipeline_mode = #tpu.pipeline_mode<synchronous>, transform_indices = @transform_2, window_bounds = array<i64: 2048, 64>}, {pipeline_mode = #tpu.pipeline_mode<synchronous>, transform_indices = @transform_3, window_bounds = array<i64: 768, 64>}, {pipeline_mode = #tpu.pipeline_mode<synchronous>, transform_indices = @transform_4, window_bounds = array<i64: 1, 64>}, {pipeline_mode = #tpu.pipeline_mode<synchronous>, transform_indices = @transform_5, window_bounds = array<i64: 64, 64>}, {pipeline_mode = #tpu.pipeline_mode<synchronous>, transform_indices = @transform_6, window_bounds = array<i64: 1, 64>}, {pipeline_mode = #tpu.pipeline_mode<synchronous>, transform_indices = @transform_7, window_bounds = array<i64: 1, 64>}, {pipeline_mode = #tpu.pipeline_mode<synchronous>, transform_indices = @transform_8, window_bounds = array<i64: 1, 64>}, {pipeline_mode = #tpu.pipeline_mode<synchronous>, transform_indices = @transform_9, window_bounds = array<i64: 64, 2048>}, {pipeline_mode = #tpu.pipeline_mode<synchronous>, transform_indices = @transform_10, window_bounds = array<i64: 1, 2048>}, {pipeline_mode = #tpu.pipeline_mode<synchronous>, transform_indices = @transform_11, window_bounds = array<i64: 2048, 64>}, {pipeline_mode = #tpu.pipeline_mode<synchronous>, transform_indices = @transform_12, window_bounds = array<i64: 1, 64>}, {pipeline_mode = #tpu.pipeline_mode<synchronous>, transform_indices = @transform_13, window_bounds = array<i64: 1, 64>}, {pipeline_mode = #tpu.pipeline_mode<synchronous>, transform_indices = @transform_14, window_bounds = array<i64: 1, 64>}, {pipeline_mode = #tpu.pipeline_mode<synchronous>, transform_indices = @transform_15, window_bounds = array<i64: 64, 128>}, {pipeline_mode = #tpu.pipeline_mode<synchronous>, transform_indices = @transform_16, window_bounds = array<i64: 1, 128>}, {pipeline_mode = #tpu.pipeline_mode<synchronous>, transform_indices = @transform_17, window_bounds = array<i64: 128, 128>}, {pipeline_mode = #tpu.pipeline_mode<synchronous>, transform_indices = @transform_18, window_bounds = array<i64: 1, 128>}, {transform_indices = @transform_19, window_bounds = array<i64: 16, 128>}]} {
    %c0 = arith.constant 0 : index
    %c0_0 = arith.constant 0 : index
    %0 = vector.load %arg1[%c0, %c0_0] : memref<16x2048xf32, #tpu.memory_space<vmem>>, vector<16x2048xf32>
    %1 = arith.truncf %0 : vector<16x2048xf32> to vector<16x2048xbf16>
    %c0_1 = arith.constant 0 : index
    %c0_2 = arith.constant 0 : index
    %2 = vector.load %arg2[%c0_1, %c0_2] : memref<16x768xf32, #tpu.memory_space<vmem>>, vector<16x768xf32>
    %3 = arith.truncf %2 : vector<16x768xf32> to vector<16x768xbf16>
    %c0_3 = arith.constant 0 : index
    %c0_4 = arith.constant 0 : index
    %4 = vector.load %arg3[%c0_3, %c0_4] : memref<2048x64xbf16, #tpu.memory_space<vmem>>, vector<2048x64xbf16>
    %cst = arith.constant dense<0.000000e+00> : vector<16x64xf32>
    %5 = tpu.matmul %1, %4, %cst {dimension_numbers = #tpu.dot_dimension_numbers<[1], [0], [0], [1], [0, 0, 1, 1], [], []>} : vector<16x2048xbf16>, vector<2048x64xbf16>, vector<16x64xf32> -> vector<16x64xf32>
    %c0_5 = arith.constant 0 : index
    %c0_6 = arith.constant 0 : index
    %6 = vector.load %arg4[%c0_5, %c0_6] : memref<768x64xbf16, #tpu.memory_space<vmem>>, vector<768x64xbf16>
    %cst_7 = arith.constant dense<0.000000e+00> : vector<16x64xf32>
    %7 = tpu.matmul %3, %6, %cst_7 {dimension_numbers = #tpu.dot_dimension_numbers<[1], [0], [0], [1], [0, 0, 1, 1], [], []>} : vector<16x768xbf16>, vector<768x64xbf16>, vector<16x64xf32> -> vector<16x64xf32>
    %8 = arith.addf %5, %7 : vector<16x64xf32>
    %c0_8 = arith.constant 0 : index
    %c0_9 = arith.constant 0 : index
    %9 = vector.load %arg5[%c0_8, %c0_9] : memref<1x64xf32, #tpu.memory_space<vmem>>, vector<1x64xf32>
    %10 = vector.broadcast %9 : vector<1x64xf32> to vector<16x64xf32>
    %11 = arith.addf %8, %10 : vector<16x64xf32>
    %cst_10 = arith.constant 0.000000e+00 : f32
    %12 = vector.broadcast %cst_10 : f32 to vector<16x64xf32>
    %13 = arith.maximumf %11, %12 : vector<16x64xf32>
    %14 = arith.truncf %13 : vector<16x64xf32> to vector<16x64xbf16>
    %c0_11 = arith.constant 0 : index
    %c0_12 = arith.constant 0 : index
    %15 = vector.load %arg6[%c0_11, %c0_12] : memref<64x64xbf16, #tpu.memory_space<vmem>>, vector<64x64xbf16>
    %cst_13 = arith.constant dense<0.000000e+00> : vector<16x64xf32>
    %16 = tpu.matmul %14, %15, %cst_13 {dimension_numbers = #tpu.dot_dimension_numbers<[1], [0], [0], [1], [0, 0, 1, 1], [], []>} : vector<16x64xbf16>, vector<64x64xbf16>, vector<16x64xf32> -> vector<16x64xf32>
    %c0_14 = arith.constant 0 : index
    %c0_15 = arith.constant 0 : index
    %17 = vector.load %arg7[%c0_14, %c0_15] : memref<1x64xf32, #tpu.memory_space<vmem>>, vector<1x64xf32>
    %18 = vector.broadcast %17 : vector<1x64xf32> to vector<16x64xf32>
    %19 = arith.addf %16, %18 : vector<16x64xf32>
    %c0_16 = arith.constant 0 : index
    %c0_17 = arith.constant 0 : index
    %20 = vector.load %arg8[%c0_16, %c0_17] : memref<1x64xf32, #tpu.memory_space<vmem>>, vector<1x64xf32>
    %c0_18 = arith.constant 0 : index
    %c0_19 = arith.constant 0 : index
    %21 = vector.load %arg9[%c0_18, %c0_19] : memref<1x64xf32, #tpu.memory_space<vmem>>, vector<1x64xf32>
    %cst_20 = arith.constant dense<0.000000e+00> : vector<16xf32>
    %22 = vector.multi_reduction <add>, %19, %cst_20 [1] : vector<16x64xf32> to vector<16xf32>
    %23 = vector.shape_cast %22 : vector<16xf32> to vector<16x1xf32>
    %cst_21 = arith.constant 6.400000e+01 : f32
    %24 = vector.broadcast %cst_21 : f32 to vector<16x1xf32>
    %25 = arith.divf %23, %24 : vector<16x1xf32>
    %26 = vector.broadcast %25 : vector<16x1xf32> to vector<16x64xf32>
    %27 = arith.subf %19, %26 : vector<16x64xf32>
    %28 = arith.mulf %27, %27 : vector<16x64xf32>
    %cst_22 = arith.constant dense<0.000000e+00> : vector<16xf32>
    %29 = vector.multi_reduction <add>, %28, %cst_22 [1] : vector<16x64xf32> to vector<16xf32>
    %30 = vector.shape_cast %29 : vector<16xf32> to vector<16x1xf32>
    %cst_23 = arith.constant 6.400000e+01 : f32
    %31 = vector.broadcast %cst_23 : f32 to vector<16x1xf32>
    %32 = arith.divf %30, %31 : vector<16x1xf32>
    %33 = vector.broadcast %25 : vector<16x1xf32> to vector<16x64xf32>
    %34 = arith.subf %19, %33 : vector<16x64xf32>
    %cst_24 = arith.constant 9.99999974E-6 : f32
    %35 = vector.broadcast %cst_24 : f32 to vector<16x1xf32>
    %36 = arith.addf %32, %35 : vector<16x1xf32>
    %37 = math.rsqrt %36 : vector<16x1xf32>
    %38 = vector.broadcast %37 : vector<16x1xf32> to vector<16x64xf32>
    %39 = arith.mulf %34, %38 : vector<16x64xf32>
    %40 = vector.broadcast %20 : vector<1x64xf32> to vector<16x64xf32>
    %41 = arith.mulf %39, %40 : vector<16x64xf32>
    %42 = vector.broadcast %21 : vector<1x64xf32> to vector<16x64xf32>
    %43 = arith.addf %41, %42 : vector<16x64xf32>
    %44 = arith.truncf %43 : vector<16x64xf32> to vector<16x64xbf16>
    %c0_25 = arith.constant 0 : index
    %c0_26 = arith.constant 0 : index
    %45 = vector.load %arg10[%c0_25, %c0_26] : memref<64x2048xbf16, #tpu.memory_space<vmem>>, vector<64x2048xbf16>
    %cst_27 = arith.constant dense<0.000000e+00> : vector<16x2048xf32>
    %46 = tpu.matmul %44, %45, %cst_27 {dimension_numbers = #tpu.dot_dimension_numbers<[1], [0], [0], [1], [0, 0, 1, 1], [], []>} : vector<16x64xbf16>, vector<64x2048xbf16>, vector<16x2048xf32> -> vector<16x2048xf32>
    %c0_28 = arith.constant 0 : index
    %c0_29 = arith.constant 0 : index
    %47 = vector.load %arg11[%c0_28, %c0_29] : memref<1x2048xf32, #tpu.memory_space<vmem>>, vector<1x2048xf32>
    %48 = vector.broadcast %47 : vector<1x2048xf32> to vector<16x2048xf32>
    %49 = arith.addf %46, %48 : vector<16x2048xf32>
    %cst_30 = arith.constant 0.000000e+00 : f32
    %50 = vector.broadcast %cst_30 : f32 to vector<16x2048xf32>
    %51 = arith.maximumf %49, %50 : vector<16x2048xf32>
    %52 = arith.truncf %51 : vector<16x2048xf32> to vector<16x2048xbf16>
    %c0_31 = arith.constant 0 : index
    %c0_32 = arith.constant 0 : index
    %53 = vector.load %arg12[%c0_31, %c0_32] : memref<2048x64xbf16, #tpu.memory_space<vmem>>, vector<2048x64xbf16>
    %cst_33 = arith.constant dense<0.000000e+00> : vector<16x64xf32>
    %54 = tpu.matmul %52, %53, %cst_33 {dimension_numbers = #tpu.dot_dimension_numbers<[1], [0], [0], [1], [0, 0, 1, 1], [], []>} : vector<16x2048xbf16>, vector<2048x64xbf16>, vector<16x64xf32> -> vector<16x64xf32>
    %c0_34 = arith.constant 0 : index
    %c0_35 = arith.constant 0 : index
    %55 = vector.load %arg13[%c0_34, %c0_35] : memref<1x64xf32, #tpu.memory_space<vmem>>, vector<1x64xf32>
    %56 = vector.broadcast %55 : vector<1x64xf32> to vector<16x64xf32>
    %57 = arith.addf %54, %56 : vector<16x64xf32>
    %58 = arith.addf %43, %57 : vector<16x64xf32>
    %c0_36 = arith.constant 0 : index
    %c0_37 = arith.constant 0 : index
    %59 = vector.load %arg14[%c0_36, %c0_37] : memref<1x64xf32, #tpu.memory_space<vmem>>, vector<1x64xf32>
    %c0_38 = arith.constant 0 : index
    %c0_39 = arith.constant 0 : index
    %60 = vector.load %arg15[%c0_38, %c0_39] : memref<1x64xf32, #tpu.memory_space<vmem>>, vector<1x64xf32>
    %cst_40 = arith.constant dense<0.000000e+00> : vector<16xf32>
    %61 = vector.multi_reduction <add>, %58, %cst_40 [1] : vector<16x64xf32> to vector<16xf32>
    %62 = vector.shape_cast %61 : vector<16xf32> to vector<16x1xf32>
    %cst_41 = arith.constant 6.400000e+01 : f32
    %63 = vector.broadcast %cst_41 : f32 to vector<16x1xf32>
    %64 = arith.divf %62, %63 : vector<16x1xf32>
    %65 = vector.broadcast %64 : vector<16x1xf32> to vector<16x64xf32>
    %66 = arith.subf %58, %65 : vector<16x64xf32>
    %67 = arith.mulf %66, %66 : vector<16x64xf32>
    %cst_42 = arith.constant dense<0.000000e+00> : vector<16xf32>
    %68 = vector.multi_reduction <add>, %67, %cst_42 [1] : vector<16x64xf32> to vector<16xf32>
    %69 = vector.shape_cast %68 : vector<16xf32> to vector<16x1xf32>
    %cst_43 = arith.constant 6.400000e+01 : f32
    %70 = vector.broadcast %cst_43 : f32 to vector<16x1xf32>
    %71 = arith.divf %69, %70 : vector<16x1xf32>
    %72 = vector.broadcast %64 : vector<16x1xf32> to vector<16x64xf32>
    %73 = arith.subf %58, %72 : vector<16x64xf32>
    %cst_44 = arith.constant 9.99999974E-6 : f32
    %74 = vector.broadcast %cst_44 : f32 to vector<16x1xf32>
    %75 = arith.addf %71, %74 : vector<16x1xf32>
    %76 = math.rsqrt %75 : vector<16x1xf32>
    %77 = vector.broadcast %76 : vector<16x1xf32> to vector<16x64xf32>
    %78 = arith.mulf %73, %77 : vector<16x64xf32>
    %79 = vector.broadcast %59 : vector<1x64xf32> to vector<16x64xf32>
    %80 = arith.mulf %78, %79 : vector<16x64xf32>
    %81 = vector.broadcast %60 : vector<1x64xf32> to vector<16x64xf32>
    %82 = arith.addf %80, %81 : vector<16x64xf32>
    %83 = arith.truncf %82 : vector<16x64xf32> to vector<16x64xbf16>
    %c0_45 = arith.constant 0 : index
    %c0_46 = arith.constant 0 : index
    %84 = vector.load %arg16[%c0_45, %c0_46] : memref<64x128xbf16, #tpu.memory_space<vmem>>, vector<64x128xbf16>
    %cst_47 = arith.constant dense<0.000000e+00> : vector<16x128xf32>
    %85 = tpu.matmul %83, %84, %cst_47 {dimension_numbers = #tpu.dot_dimension_numbers<[1], [0], [0], [1], [0, 0, 1, 1], [], []>} : vector<16x64xbf16>, vector<64x128xbf16>, vector<16x128xf32> -> vector<16x128xf32>
    %c0_48 = arith.constant 0 : index
    %c0_49 = arith.constant 0 : index
    %86 = vector.load %arg17[%c0_48, %c0_49] : memref<1x128xf32, #tpu.memory_space<vmem>>, vector<1x128xf32>
    %87 = vector.broadcast %86 : vector<1x128xf32> to vector<16x128xf32>
    %88 = arith.addf %85, %87 : vector<16x128xf32>
    %cst_50 = arith.constant 0.000000e+00 : f32
    %89 = vector.broadcast %cst_50 : f32 to vector<16x128xf32>
    %90 = arith.maximumf %88, %89 : vector<16x128xf32>
    %91 = arith.truncf %90 : vector<16x128xf32> to vector<16x128xbf16>
    %c0_51 = arith.constant 0 : index
    %c0_52 = arith.constant 0 : index
    %92 = vector.load %arg18[%c0_51, %c0_52] : memref<128x128xbf16, #tpu.memory_space<vmem>>, vector<128x128xbf16>
    %cst_53 = arith.constant dense<0.000000e+00> : vector<16x128xf32>
    %93 = tpu.matmul %91, %92, %cst_53 {dimension_numbers = #tpu.dot_dimension_numbers<[1], [0], [0], [1], [0, 0, 1, 1], [], []>} : vector<16x128xbf16>, vector<128x128xbf16>, vector<16x128xf32> -> vector<16x128xf32>
    %c0_54 = arith.constant 0 : index
    %c0_55 = arith.constant 0 : index
    %94 = vector.load %arg19[%c0_54, %c0_55] : memref<1x128xf32, #tpu.memory_space<vmem>>, vector<1x128xf32>
    %95 = vector.broadcast %94 : vector<1x128xf32> to vector<16x128xf32>
    %96 = arith.addf %93, %95 : vector<16x128xf32>
    %c0_56 = arith.constant 0 : index
    %c0_57 = arith.constant 0 : index
    %97 = vector.load %arg20[%c0_56, %c0_57] : memref<16x128xf32, #tpu.memory_space<vmem>>, vector<16x128xf32>
    tpu.vector_store %arg20[%c0_56, %c0_57], %96 {strides = array<i32>} : memref<16x128xf32, #tpu.memory_space<vmem>>, vector<16x128xf32>,
    return
  }
  func.func @transform_0(%arg0: i32) -> (i32, i32) {
    %c0_i32 = arith.constant 0 : i32
    %c0_i32_0 = arith.constant 0 : i32
    return %arg0, %c0_i32 : i32, i32
  }
  func.func @transform_1(%arg0: i32) -> (i32, i32) {
    %c0_i32 = arith.constant 0 : i32
    %c0_i32_0 = arith.constant 0 : i32
    return %arg0, %c0_i32 : i32, i32
  }
  func.func @transform_2(%arg0: i32) -> (i32, i32) {
    %c0_i32 = arith.constant 0 : i32
    %c0_i32_0 = arith.constant 0 : i32
    %c0_i32_1 = arith.constant 0 : i32
    return %c0_i32, %c0_i32_0 : i32, i32
  }
  func.func @transform_3(%arg0: i32) -> (i32, i32) {
    %c0_i32 = arith.constant 0 : i32
    %c0_i32_0 = arith.constant 0 : i32
    %c0_i32_1 = arith.constant 0 : i32
    return %c0_i32, %c0_i32_0 : i32, i32
  }
  func.func @transform_4(%arg0: i32) -> (i32, i32) {
    %c0_i32 = arith.constant 0 : i32
    %c0_i32_0 = arith.constant 0 : i32
    %c0_i32_1 = arith.constant 0 : i32
    return %c0_i32, %c0_i32_0 : i32, i32
  }
  func.func @transform_5(%arg0: i32) -> (i32, i32) {
    %c0_i32 = arith.constant 0 : i32
    %c0_i32_0 = arith.constant 0 : i32
    %c0_i32_1 = arith.constant 0 : i32
    return %c0_i32, %c0_i32_0 : i32, i32
  }
  func.func @transform_6(%arg0: i32) -> (i32, i32) {
    %c0_i32 = arith.constant 0 : i32
    %c0_i32_0 = arith.constant 0 : i32
    %c0_i32_1 = arith.constant 0 : i32
    return %c0_i32, %c0_i32_0 : i32, i32
  }
  func.func @transform_7(%arg0: i32) -> (i32, i32) {
    %c0_i32 = arith.constant 0 : i32
    %c0_i32_0 = arith.constant 0 : i32
    %c0_i32_1 = arith.constant 0 : i32
    return %c0_i32, %c0_i32_0 : i32, i32
  }
  func.func @transform_8(%arg0: i32) -> (i32, i32) {
    %c0_i32 = arith.constant 0 : i32
    %c0_i32_0 = arith.constant 0 : i32
    %c0_i32_1 = arith.constant 0 : i32
    return %c0_i32, %c0_i32_0 : i32, i32
  }
  func.func @transform_9(%arg0: i32) -> (i32, i32) {
    %c0_i32 = arith.constant 0 : i32
    %c0_i32_0 = arith.constant 0 : i32
    %c0_i32_1 = arith.constant 0 : i32
    return %c0_i32, %c0_i32_0 : i32, i32
  }
  func.func @transform_10(%arg0: i32) -> (i32, i32) {
    %c0_i32 = arith.constant 0 : i32
    %c0_i32_0 = arith.constant 0 : i32
    %c0_i32_1 = arith.constant 0 : i32
    return %c0_i32, %c0_i32_0 : i32, i32
  }
  func.func @transform_11(%arg0: i32) -> (i32, i32) {
    %c0_i32 = arith.constant 0 : i32
    %c0_i32_0 = arith.constant 0 : i32
    %c0_i32_1 = arith.constant 0 : i32
    return %c0_i32, %c0_i32_0 : i32, i32
  }
  func.func @transform_12(%arg0: i32) -> (i32, i32) {
    %c0_i32 = arith.constant 0 : i32
    %c0_i32_0 = arith.constant 0 : i32
    %c0_i32_1 = arith.constant 0 : i32
    return %c0_i32, %c0_i32_0 : i32, i32
  }
  func.func @transform_13(%arg0: i32) -> (i32, i32) {
    %c0_i32 = arith.constant 0 : i32
    %c0_i32_0 = arith.constant 0 : i32
    %c0_i32_1 = arith.constant 0 : i32
    return %c0_i32, %c0_i32_0 : i32, i32
  }
  func.func @transform_14(%arg0: i32) -> (i32, i32) {
    %c0_i32 = arith.constant 0 : i32
    %c0_i32_0 = arith.constant 0 : i32
    %c0_i32_1 = arith.constant 0 : i32
    return %c0_i32, %c0_i32_0 : i32, i32
  }
  func.func @transform_15(%arg0: i32) -> (i32, i32) {
    %c0_i32 = arith.constant 0 : i32
    %c0_i32_0 = arith.constant 0 : i32
    %c0_i32_1 = arith.constant 0 : i32
    return %c0_i32, %c0_i32_0 : i32, i32
  }
  func.func @transform_16(%arg0: i32) -> (i32, i32) {
    %c0_i32 = arith.constant 0 : i32
    %c0_i32_0 = arith.constant 0 : i32
    %c0_i32_1 = arith.constant 0 : i32
    return %c0_i32, %c0_i32_0 : i32, i32
  }
  func.func @transform_17(%arg0: i32) -> (i32, i32) {
    %c0_i32 = arith.constant 0 : i32
    %c0_i32_0 = arith.constant 0 : i32
    %c0_i32_1 = arith.constant 0 : i32
    return %c0_i32, %c0_i32_0 : i32, i32
  }
  func.func @transform_18(%arg0: i32) -> (i32, i32) {
    %c0_i32 = arith.constant 0 : i32
    %c0_i32_0 = arith.constant 0 : i32
    %c0_i32_1 = arith.constant 0 : i32
    return %c0_i32, %c0_i32_0 : i32, i32
  }
  func.func @transform_19(%arg0: i32) -> (i32, i32) {
    %c0_i32 = arith.constant 0 : i32
    %c0_i32_0 = arith.constant 0 : i32
    return %arg0, %c0_i32 : i32, i32
  }
}

</mosaic_0001>

<bundles_post_ra>
// kernel: fuse_forward.1
= control target key start
LH: loop header
LB: loop body
LE: loop exit
PB: predicated region body
PF: predicated region fallthrough
CT: control target
= control target key end

     0   :  { %vm5819_vm0 = vmmov 0   ;;  %vm2039_vm1 = vcmask 523264   ;;  %s7395_s3 = inlined_call_operand.vmem [shape: bf16[768,64], index: 3, kind: input, shape index: {}]   ;;  %s7396_s1 = inlined_call_operand.vmem [shape: f32[16,768], index: 1, kind: input, shape index: {}]   ;;  %s7397_s2 = inlined_call_operand.vmem [shape: bf16[2048,64], index: 2, kind: input, shape index: {}]   ;;  %s7398_s0 = inlined_call_operand.vmem [shape: f32[16,2048], index: 0, kind: input, shape index: {}]   ;;  %s7399_s5 = inlined_call_operand.vmem [shape: bf16[64,64], index: 5, kind: input, shape index: {}]   ;;  %s7400_s4 = inlined_call_operand.vmem [shape: f32[1,64], index: 4, kind: input, shape index: {}]   ;;  %s7401_s6 = inlined_call_operand.vmem [shape: f32[1,64], index: 6, kind: input, shape index: {}]   ;;  %s7402_s9 = inlined_call_operand.vmem [shape: bf16[64,2048], index: 9, kind: input, shape index: {}]   ;;  %s7403_s11 = inlined_call_operand.vmem [shape: bf16[2048,64], index: 11, kind: input, shape index: {}]   ;;  %s7404_s7 = inlined_call_operand.vmem [shape: f32[1,64], index: 7, kind: input, shape index: {}]   ;;  %s7405_s8 = inlined_call_operand.vmem [shape: f32[1,64], index: 8, kind: input, shape index: {}]   ;;  %s7406_s10 = inlined_call_operand.vmem [shape: f32[1,2048], index: 10, kind: input, shape index: {}]   ;;  %s7407_s12 = inlined_call_operand.vmem [shape: f32[1,64], index: 12, kind: input, shape index: {}]   ;;  %s7408_s15 = inlined_call_operand.vmem [shape: bf16[64,128], index: 15, kind: input, shape index: {}]   ;;  %s7409_s17 = inlined_call_operand.vmem [shape: bf16[128,128], index: 17, kind: input, shape index: {}]   ;;  %s7410_s13 = inlined_call_operand.vmem [shape: f32[1,64], index: 13, kind: input, shape index: {}]   ;;  %s7411_s14 = inlined_call_operand.vmem [shape: f32[1,64], index: 14, kind: input, shape index: {}]   ;;  %s7412_s16 = inlined_call_operand.vmem [shape: f32[1,128], index: 16, kind: input, shape index: {}]   ;;  %s7413_s18 = inlined_call_operand.vmem [shape: f32[1,128], index: 18, kind: input, shape index: {}]   ;;  %s7414_s19 = inlined_call_operand.vmem [shape: f32[16,128], index: 19, kind: output, shape index: {}]  }
   0x1   :  { %7419 = sst [smem:[#allocation2_spill]] %s7395_s3 }
   0x2   :  { %7420 = sst [smem:[#allocation3_spill]] %s7396_s1  ;;  %s7423_s20 = sld [smem:[#allocation2_spill]] }
   0x3   :  { %7421 = sst [smem:[#allocation4_spill]] %s7397_s2  ;;  %s7424_s26 = sld [smem:[#allocation3_spill]] }
   0x4   :  { %7422 = sst [smem:[#allocation5_spill]] %s7398_s0  ;;  %s7425_s22 = sld [smem:[#allocation4_spill]] }
   0x5   :  { %s7426_s30 = sld [smem:[#allocation5_spill]] }
   0x8   :  { %v5490_v0 = vld [vmem:[%s7423_s20 + $0x40] sm:$0xff]   ;;  %v5494_v4 = vld [vmem:[%s7423_s20 + $0x48] sm:$0xff]   ;;  %v5498_v8 = vld [vmem:[%s7423_s20 + $0x50] sm:$0xff]  }
   0x9   :  { %v5491_v1 = vld [vmem:[%s7423_s20 + $0xc0] sm:$0xff]   ;;  %5006 = vmatprep.subr.bf16.mxu0 %v5490_v0  ;;  %v5495_v5 = vld [vmem:[%s7423_s20 + $0xc8] sm:$0xff]   ;;  %v5499_v9 = vld [vmem:[%s7423_s20 + $0xd0] sm:$0xff]  }
   0xa   :  { %v5492_v2 = vld [vmem:[%s7423_s20] sm:$0xff]   ;;  %5028 = vmatprep.subr.bf16.mxu1 %v5491_v1  ;;  %v5496_v6 = vld [vmem:[%s7423_s20 + $0x8] sm:$0xff]   ;;  %v5500_v10 = vld [vmem:[%s7423_s20 + $0x10] sm:$0xff]  }
   0xb   :  { %v5493_v3 = vld [vmem:[%s7423_s20 + $0x80] sm:$0xff]   ;;  %5007 = vmatpush3.bf16.msra.mxu0 %v5492_v2  ;;  %v5497_v7 = vld [vmem:[%s7423_s20 + $0x88] sm:$0xff]   ;;  %v5501_v11 = vld [vmem:[%s7423_s20 + $0x90] sm:$0xff]  }
   0xc   :  { %5029 = vmatpush3.bf16.msra.mxu1 %v5493_v3  ;;  %5008 = vmatprep.subr.bf16.mxu0 %v5494_v4  ;;  %v5502_v12 = vld [vmem:[%s7423_s20 + $0x58] sm:$0xff]   ;;  %v5506_v16 = vld [vmem:[%s7423_s20 + $0x60] sm:$0xff]   ;;  %v5510_v20 = vld [vmem:[%s7423_s20 + $0x68] sm:$0xff]  }
   0xd   :  { %5030 = vmatprep.subr.bf16.mxu1 %v5495_v5  ;;  %v5503_v13 = vld [vmem:[%s7423_s20 + $0xd8] sm:$0xff]   ;;  %v5507_v17 = vld [vmem:[%s7423_s20 + $0xe0] sm:$0xff]   ;;  %v5511_v21 = vld [vmem:[%s7423_s20 + $0xe8] sm:$0xff]  }
   0xe   :  { %v5504_v14 = vld [vmem:[%s7423_s20 + $0x18] sm:$0xff]   ;;  %v5508_v18 = vld [vmem:[%s7423_s20 + $0x20] sm:$0xff]   ;;  %v5512_v22 = vld [vmem:[%s7423_s20 + $0x28] sm:$0xff]  }
   0xf   :  { %5009 = vmatpush3.bf16.msra.mxu0 %v5496_v6  ;;  %v5505_v15 = vld [vmem:[%s7423_s20 + $0x98] sm:$0xff]   ;;  %v5509_v19 = vld [vmem:[%s7423_s20 + $0xa0] sm:$0xff]   ;;  %v5513_v23 = vld [vmem:[%s7423_s20 + $0xa8] sm:$0xff]  }
  0x10   :  { %5031 = vmatpush3.bf16.msra.mxu1 %v5497_v7  ;;  %5010 = vmatprep.subr.bf16.mxu0 %v5498_v8  ;;  %v5514_v24 = vld [vmem:[%s7423_s20 + $0x70] sm:$0xff]   ;;  %v5518_v28 = vld [vmem:[%s7423_s20 + $0x78] sm:$0xff]   ;;  %v112_v32 = vld [vmem:[%s7424_s26 + $0x8] sm:$0xff] }
  0x11   :  { %5032 = vmatprep.subr.bf16.mxu1 %v5499_v9  ;;  %v5515_v25 = vld [vmem:[%s7423_s20 + $0xf0] sm:$0xff]   ;;  %v5519_v29 = vld [vmem:[%s7423_s20 + $0xf8] sm:$0xff]   ;;  %v120_v36 = vld [vmem:[%s7424_s26 + $0x48] sm:$0xff] }
  0x12   :  { %v5516_v26 = vld [vmem:[%s7423_s20 + $0x30] sm:$0xff]   ;;  %v5520_v30 = vld [vmem:[%s7423_s20 + $0x38] sm:$0xff]   ;;  %v111_v37 = vld [vmem:[%s7424_s26] sm:$0xff] }
  0x13   :  { %5011 = vmatpush3.bf16.msra.mxu0 %v5500_v10  ;;  %v5517_v27 = vld [vmem:[%s7423_s20 + $0xb0] sm:$0xff]   ;;  %v5521_v31 = vld [vmem:[%s7423_s20 + $0xb8] sm:$0xff]   ;;  %v119_v42 = vld [vmem:[%s7424_s26 + $0x40] sm:$0xff] }
  0x14   :  { %5033 = vmatpush3.bf16.msra.mxu1 %v5501_v11  ;;  %5012 = vmatprep.subr.bf16.mxu0 %v5502_v12  ;;  %v118_v33 = vld [vmem:[%s7424_s26 + $0x38] sm:$0xff]  ;;  %v117_v38 = vld [vmem:[%s7424_s26 + $0x30] sm:$0xff]  ;;  %v5522_v44 = vld [vmem:[%s7423_s20 + $0x140] sm:$0xff]  }
  0x15   :  { %5034 = vmatprep.subr.bf16.mxu1 %v5503_v13  ;;  %v114_v34 = vld [vmem:[%s7424_s26 + $0x18] sm:$0xff]  ;;  %v124_v35 = vpack.c.bf16 %v118_v33, %v112_v32  ;;  %v123_v40 = vpack.c.bf16 %v117_v38, %v111_v37  ;;  %v113_v41 = vld [vmem:[%s7424_s26 + $0x10] sm:$0xff]  ;;  %v5523_v45 = vld [vmem:[%s7423_s20 + $0x100] sm:$0xff]  }
  0x16   :  { %v126_v39 = vpack.c.bf16 %v120_v36, %v114_v34  ;;  %v125_v43 = vpack.c.bf16 %v119_v42, %v113_v41  ;;  %v5524_v46 = vld [vmem:[%s7425_s22 + $0x40] sm:$0xff]   ;;  %v5526_v48 = vld [vmem:[%s7423_s20 + $0x148] sm:$0xff]   ;;  %v5530_v52 = vld [vmem:[%s7423_s20 + $0x150] sm:$0xff]  }
  0x17   :  { %5013 = vmatpush3.bf16.msra.mxu0 %v5504_v14  ;;  %801 = vmatprep.mubr.bf16.mxu0 %v124_v35  ;;  %v5525_v47 = vld [vmem:[%s7425_s22] sm:$0xff]   ;;  %v5527_v49 = vld [vmem:[%s7423_s20 + $0x108] sm:$0xff]   ;;  %v5531_v53 = vld [vmem:[%s7423_s20 + $0x110] sm:$0xff]  }
  0x18   :  { %5035 = vmatpush3.bf16.msra.mxu1 %v5505_v15  ;;  %5014 = vmatprep.subr.bf16.mxu0 %v5506_v16  ;;  %v5528_v50 = vld [vmem:[%s7425_s22 + $0x48] sm:$0xff]   ;;  %v5532_v54 = vld [vmem:[%s7425_s22 + $0x50] sm:$0xff]   ;;  %v5534_v56 = vld [vmem:[%s7423_s20 + $0x158] sm:$0xff]  }
  0x19   :  { %5036 = vmatprep.subr.bf16.mxu1 %v5507_v17  ;;  %842 = vmatprep.mubr.bf16.mxu1 %v126_v39  ;;  %v5529_v51 = vld [vmem:[%s7425_s22 + $0x8] sm:$0xff]   ;;  %v5533_v55 = vld [vmem:[%s7425_s22 + $0x10] sm:$0xff]   ;;  %v5535_v57 = vld [vmem:[%s7423_s20 + $0x118] sm:$0xff]  }
  0x1a   :  { %v5536_v58 = vld [vmem:[%s7425_s22 + $0x58] sm:$0xff]   ;;  %v5538_v60 = vld [vmem:[%s7423_s20 + $0x160] sm:$0xff]   ;;  %v5542_v0 = vld [vmem:[%s7423_s20 + $0x168] sm:$0xff]  }
  0x1b   :  { %5015 = vmatpush3.bf16.msra.mxu0 %v5508_v18  ;;  %v5537_v59 = vld [vmem:[%s7425_s22 + $0x18] sm:$0xff]   ;;  %v5539_v61 = vld [vmem:[%s7423_s20 + $0x120] sm:$0xff]   ;;  %v5543_v1 = vld [vmem:[%s7423_s20 + $0x128] sm:$0xff]  }
  0x1c   :  { %5037 = vmatpush3.bf16.msra.mxu1 %v5509_v19  ;;  %5016 = vmatprep.subr.bf16.mxu0 %v5510_v20  ;;  %v5540_v62 = vld [vmem:[%s7425_s22 + $0x60] sm:$0xff]   ;;  %v5544_v2 = vld [vmem:[%s7425_s22 + $0x68] sm:$0xff]   ;;  %v5546_v4 = vld [vmem:[%s7423_s20 + $0x170] sm:$0xff]  }
  0x1d   :  { %5038 = vmatprep.subr.bf16.mxu1 %v5511_v21  ;;  %v5541_v63 = vld [vmem:[%s7425_s22 + $0x20] sm:$0xff]   ;;  %v5545_v3 = vld [vmem:[%s7425_s22 + $0x28] sm:$0xff]   ;;  %v5547_v5 = vld [vmem:[%s7423_s20 + $0x130] sm:$0xff]  }
  0x1e   :  { %v5548_v6 = vld [vmem:[%s7425_s22 + $0x70] sm:$0xff]   ;;  %v5550_v8 = vld [vmem:[%s7423_s20 + $0x178] sm:$0xff]   ;;  %v116_v11 = vld [vmem:[%s7424_s26 + $0x28] sm:$0xff] }
  0x1f   :  { %5017 = vmatpush3.bf16.msra.mxu0 %v5512_v22  ;;  %v5549_v7 = vld [vmem:[%s7425_s22 + $0x30] sm:$0xff]   ;;  %v5551_v9 = vld [vmem:[%s7423_s20 + $0x138] sm:$0xff]   ;;  %v115_v15 = vld [vmem:[%s7424_s26 + $0x20] sm:$0xff] }
  0x20   :  { %5039 = vmatpush3.bf16.msra.mxu1 %v5513_v23  ;;  %5018 = vmatprep.subr.bf16.mxu0 %v5514_v24  ;;  %v5552_v10 = vld [vmem:[%s7425_s22 + $0x78] sm:$0xff]   ;;  %v121_v16 = vld [vmem:[%s7424_s26 + $0x50] sm:$0xff]  ;;  %v5554_v18 = vld [vmem:[%s7425_s22 + $0xc0] sm:$0xff]  }
  0x21   :  { %5040 = vmatprep.subr.bf16.mxu1 %v5515_v25  ;;  %v122_v12 = vld [vmem:[%s7424_s26 + $0x58] sm:$0xff]  ;;  %v127_v17 = vpack.c.bf16 %v121_v16, %v115_v15  ;;  %v64_v19 = vld [vmem:[%s7426_s30 + $0x8] sm:$0xff]  ;;  %v5555_v22 = vld [vmem:[%s7425_s22 + $0x80] sm:$0xff]  }
  0x22   :  { %v128_v13 = vpack.c.bf16 %v122_v12, %v116_v11  ;;  %v5553_v14 = vld [vmem:[%s7425_s22 + $0x38] sm:$0xff]   ;;  %v80_v20 = vld [vmem:[%s7426_s30 + $0x88] sm:$0xff]  ;;  %v63_v23 = vld [vmem:[%s7426_s30] sm:$0xff] }
  0x23   :  { %5019 = vmatpush3.bf16.msra.mxu0 %v5516_v26  ;;  %v96_v21 = vpack.c.bf16 %v80_v20, %v64_v19  ;;  %v79_v24 = vld [vmem:[%s7426_s30 + $0x80] sm:$0xff]  ;;  %v5562_v32 = vld [vmem:[%s7425_s22 + $0xd0] sm:$0xff]   ;;  %v5566_v36 = vld [vmem:[%s7425_s22 + $0xd8] sm:$0xff]  }
  0x24   :  { %5041 = vmatpush3.bf16.msra.mxu1 %v5517_v27  ;;  %5020 = vmatprep.subr.bf16.mxu0 %v5518_v28  ;;  %v95_v25 = vpack.c.bf16 %v79_v24, %v63_v23  ;;  %v5556_v26 = vld [vmem:[%s7425_s22 + $0x140] sm:$0xff]   ;;  %v5558_v28 = vld [vmem:[%s7425_s22 + $0xc8] sm:$0xff]   ;;  %v5563_v33 = vld [vmem:[%s7425_s22 + $0x90] sm:$0xff]  }
  0x25   :  { %5042 = vmatprep.subr.bf16.mxu1 %v5519_v29  ;;  %v5557_v27 = vld [vmem:[%s7425_s22 + $0x100] sm:$0xff]   ;;  %v5559_v29 = vld [vmem:[%s7425_s22 + $0x88] sm:$0xff]   ;;  %v5564_v34 = vld [vmem:[%s7425_s22 + $0x150] sm:$0xff]  }
  0x26   :  { %v5565_v35 = vld [vmem:[%s7425_s22 + $0x110] sm:$0xff]   ;;  %v5567_v37 = vld [vmem:[%s7425_s22 + $0x98] sm:$0xff]   ;;  %v5571_v41 = vld [vmem:[%s7425_s22 + $0xa0] sm:$0xff]  }
  0x27   :  { %5021 = vmatpush3.bf16.msra.mxu0 %v5520_v30  ;;  %v5560_v30 = vld [vmem:[%s7425_s22 + $0x148] sm:$0xff]   ;;  %v5568_v38 = vld [vmem:[%s7425_s22 + $0x158] sm:$0xff]   ;;  %v5572_v42 = vld [vmem:[%s7425_s22 + $0x160] sm:$0xff]  }
  0x28   :  { %5043 = vmatpush3.bf16.msra.mxu1 %v5521_v31  ;;  %5050 = vmatprep.subr.bf16.mxu0 %v5522_v44  ;;  %v5561_v31 = vld [vmem:[%s7425_s22 + $0x108] sm:$0xff]   ;;  %v5569_v39 = vld [vmem:[%s7425_s22 + $0x118] sm:$0xff]   ;;  %v5594_v12 = vld [vmem:[%s7425_s22 + $0x1d0] sm:$0xff]  }
  0x29   :  { %5072 = vmatprep.subr.bf16.mxu1 %v5524_v46  ;;  %v5574_v44 = vld [vmem:[%s7425_s22 + $0xe8] sm:$0xff]   ;;  %v5597_v15 = vld [vmem:[%s7425_s22 + $0x210] sm:$0xff]   ;;  %v5598_v16 = vld [vmem:[%s7425_s22 + $0x1d8] sm:$0xff]  }
  0x2a   :  { %802 = vmatmul.mubr.bf16.vlgmr.msra.gmra.mrb[0].mxu0 %v123_v40  ;;  %v5570_v40 = vld [vmem:[%s7425_s22 + $0xe0] sm:$0xff]   ;;  %v5576_v46 = vld [vmem:[%s7425_s22 + $0x168] sm:$0xff]   ;;  %v5601_v19 = vld [vmem:[%s7425_s22 + $0x218] sm:$0xff]  }
  0x2b   :  { %843 = vmatmul.mubr.bf16.vlgmr.msra.gmra.mrb[0].mxu1 %v125_v43  ;;  %5051 = vmatpush3.bf16.msra.mxu0 %v5523_v45  ;;  %v5573_v43 = vld [vmem:[%s7425_s22 + $0x120] sm:$0xff]   ;;  %v5575_v45 = vld [vmem:[%s7425_s22 + $0xa8] sm:$0xff]  }
  0x2c   :  { %5073 = vmatpush3.bf16.msra.mxu1 %v5525_v47  ;;  %5052 = vmatprep.subr.bf16.mxu0 %v5526_v48  ;;  %v5577_v47 = vld [vmem:[%s7425_s22 + $0x128] sm:$0xff]   ;;  %v5578_v48 = vld [vmem:[%s7425_s22 + $0xf0] sm:$0xff]   ;;  %v5602_v20 = vld [vmem:[%s7425_s22 + $0x1e0] sm:$0xff]  }
  0x2d   :  { %5074 = vmatprep.subr.bf16.mxu1 %v5528_v50  ;;  %883 = vmatprep.mubr.bf16.mxu0 %v128_v13  ;;  %v5580_v50 = vld [vmem:[%s7425_s22 + $0x170] sm:$0xff]   ;;  %v5593_v11 = vld [vmem:[%s7425_s22 + $0x208] sm:$0xff]   ;;  %v5605_v23 = vld [vmem:[%s7425_s22 + $0x220] sm:$0xff]  }
  0x2e   :  { %1692 = vmatprep.mubr.bf16.mxu1 %v96_v21  ;;  %v5595_v13 = vld [vmem:[%s7425_s22 + $0x190] sm:$0xff]   ;;  %v5603_v21 = vld [vmem:[%s7425_s22 + $0x1a0] sm:$0xff]   ;;  %v5606_v24 = vld [vmem:[%s7425_s22 + $0x1e8] sm:$0xff]  }
  0x2f   :  { %5053 = vmatpush3.bf16.msra.mxu0 %v5527_v49  ;;  %v5579_v49 = vld [vmem:[%s7425_s22 + $0xb0] sm:$0xff]  }
  0x30   :  { %5075 = vmatpush3.bf16.msra.mxu1 %v5529_v51  ;;  %5054 = vmatprep.subr.bf16.mxu0 %v5530_v52  ;;  %v5581_v51 = vld [vmem:[%s7425_s22 + $0x130] sm:$0xff]   ;;  %v5582_v52 = vld [vmem:[%s7425_s22 + $0xf8] sm:$0xff]  }
  0x31   :  { %5076 = vmatprep.subr.bf16.mxu1 %v5532_v54  ;;  %v5584_v54 = vld [vmem:[%s7425_s22 + $0x178] sm:$0xff]  }
  0x33   :  { %5055 = vmatpush3.bf16.msra.mxu0 %v5531_v53  ;;  %v5583_v53 = vld [vmem:[%s7425_s22 + $0xb8] sm:$0xff]  }
  0x34   :  { %5077 = vmatpush3.bf16.msra.mxu1 %v5533_v55  ;;  %5056 = vmatprep.subr.bf16.mxu0 %v5534_v56  ;;  %v66_v55 = vld [vmem:[%s7426_s30 + $0x18] sm:$0xff] }
  0x35   :  { %5078 = vmatprep.subr.bf16.mxu1 %v5536_v58  ;;  %v82_v56 = vld [vmem:[%s7426_s30 + $0x98] sm:$0xff] }
  0x36   :  { %v5585_v58 = vld [vmem:[%s7425_s22 + $0x138] sm:$0xff]  }
  0x37   :  { %5057 = vmatpush3.bf16.msra.mxu0 %v5535_v57  ;;  %v98_v57 = vpack.c.bf16 %v82_v56, %v66_v55  ;;  %v5625_v55 = vld [vmem:[%s7425_s22 + $0x308] sm:$0xff]   ;;  %v5626_v56 = vld [vmem:[%s7425_s22 + $0x2d0] sm:$0xff]  }
  0x38   :  { %5079 = vmatpush3.bf16.msra.mxu1 %v5537_v59  ;;  %5058 = vmatprep.subr.bf16.mxu0 %v5538_v60  ;;  %v65_v59 = vld [vmem:[%s7426_s30 + $0x10] sm:$0xff] }
  0x39   :  { %5080 = vmatprep.subr.bf16.mxu1 %v5540_v62  ;;  %v81_v60 = vld [vmem:[%s7426_s30 + $0x90] sm:$0xff]  ;;  %v5586_v62 = vld [vmem:[%s7425_s22 + $0x1c0] sm:$0xff]  }
  0x3b   :  { %5059 = vmatpush3.bf16.msra.mxu0 %v5539_v61  ;;  %v97_v61 = vpack.c.bf16 %v81_v60, %v65_v59  ;;  %v5629_v59 = vld [vmem:[%s7425_s22 + $0x310] sm:$0xff]   ;;  %v5630_v60 = vld [vmem:[%s7425_s22 + $0x2d8] sm:$0xff]  }
  0x3c   :  { %5081 = vmatpush3.bf16.msra.mxu1 %v5541_v63  ;;  %5060 = vmatprep.subr.bf16.mxu0 %v5542_v0  ;;  %v68_v63 = vld [vmem:[%s7426_s30 + $0x28] sm:$0xff] }
  0x3d   :  { %5082 = vmatprep.subr.bf16.mxu1 %v5544_v2  ;;  %v84_v0 = vld [vmem:[%s7426_s30 + $0xa8] sm:$0xff]  ;;  %v5587_v2 = vld [vmem:[%s7425_s22 + $0x180] sm:$0xff]  }
  0x3f   :  { %5061 = vmatpush3.bf16.msra.mxu0 %v5543_v1  ;;  %v100_v1 = vpack.c.bf16 %v84_v0, %v68_v63  ;;  %v5633_v63 = vld [vmem:[%s7425_s22 + $0x318] sm:$0xff]   ;;  %v5634_v0 = vld [vmem:[%s7425_s22 + $0x2e0] sm:$0xff]  }
  0x40   :  { %5083 = vmatpush3.bf16.msra.mxu1 %v5545_v3  ;;  %5062 = vmatprep.subr.bf16.mxu0 %v5546_v4  ;;  %v67_v3 = vld [vmem:[%s7426_s30 + $0x20] sm:$0xff] }
  0x41   :  { %5084 = vmatprep.subr.bf16.mxu1 %v5548_v6  ;;  %v83_v4 = vld [vmem:[%s7426_s30 + $0xa0] sm:$0xff] }
  0x42   :  { %v5588_v6 = vld [vmem:[%s7425_s22 + $0x240] sm:$0xff]  }
  0x43   :  { %5063 = vmatpush3.bf16.msra.mxu0 %v5547_v5  ;;  %v99_v5 = vpack.c.bf16 %v83_v4, %v67_v3  ;;  %v5637_v3 = vld [vmem:[%s7425_s22 + $0x320] sm:$0xff]   ;;  %v5638_v4 = vld [vmem:[%s7425_s22 + $0x2e8] sm:$0xff]  }
  0x44   :  { %5085 = vmatpush3.bf16.msra.mxu1 %v5549_v7  ;;  %5064 = vmatprep.subr.bf16.mxu0 %v5550_v8  ;;  %v5589_v7 = vld [vmem:[%s7425_s22 + $0x200] sm:$0xff]   ;;  %v5590_v8 = vld [vmem:[%s7425_s22 + $0x1c8] sm:$0xff]  }
  0x45   :  { %5086 = vmatprep.subr.bf16.mxu1 %v5552_v10  ;;  %v5592_v10 = vld [vmem:[%s7425_s22 + $0x248] sm:$0xff]  }
  0x47   :  { %5065 = vmatpush3.bf16.msra.mxu0 %v5551_v9  ;;  %v5591_v9 = vld [vmem:[%s7425_s22 + $0x188] sm:$0xff]  }
  0x48   :  { %5087 = vmatpush3.bf16.msra.mxu1 %v5553_v14  ;;  %5094 = vmatprep.subr.bf16.mxu0 %v5554_v18  ;;  %v5596_v14 = vld [vmem:[%s7425_s22 + $0x250] sm:$0xff]   ;;  %v5600_v18 = vld [vmem:[%s7425_s22 + $0x258] sm:$0xff]  }
  0x49   :  { %5116 = vmatprep.subr.bf16.mxu1 %v5556_v26  ;;  %v5608_v26 = vld [vmem:[%s7425_s22 + $0x268] sm:$0xff]  }
  0x4a   :  { %884 = vmatmul.mubr.bf16.vlgmr.msra.gmra.mrb[4].mxu0 %v127_v17  ;;  %v5599_v17 = vld [vmem:[%s7425_s22 + $0x198] sm:$0xff]  }
  0x4b   :  { %5095 = vmatpush3.bf16.msra.mxu0 %v5555_v22  ;;  %1693 = vmatmul.mubr.bf16.vlgmr.msra.gmra.mrb[4].mxu1 %v95_v25  ;;  %v5604_v22 = vld [vmem:[%s7425_s22 + $0x260] sm:$0xff]   ;;  %v5607_v25 = vld [vmem:[%s7425_s22 + $0x1a8] sm:$0xff]  }
  0x4c   :  { %5117 = vmatpush3.bf16.msra.mxu1 %v5557_v27  ;;  %5096 = vmatprep.subr.bf16.mxu0 %v5558_v28  ;;  %v5609_v27 = vld [vmem:[%s7425_s22 + $0x228] sm:$0xff]   ;;  %v5610_v28 = vld [vmem:[%s7425_s22 + $0x1f0] sm:$0xff]  }
  0x4d   :  { %5118 = vmatprep.subr.bf16.mxu1 %v5560_v30  ;;  %1733 = vmatprep.mubr.bf16.mxu0 %v98_v57  ;;  %v5612_v30 = vld [vmem:[%s7425_s22 + $0x270] sm:$0xff]  }
  0x4e   :  { %1774 = vmatprep.mubr.bf16.mxu1 %v100_v1  ;;  %v5627_v57 = vld [vmem:[%s7425_s22 + $0x290] sm:$0xff]   ;;  %v5635_v1 = vld [vmem:[%s7425_s22 + $0x2a0] sm:$0xff]  }
  0x4f   :  { %5097 = vmatpush3.bf16.msra.mxu0 %v5559_v29  ;;  %v5611_v29 = vld [vmem:[%s7425_s22 + $0x1b0] sm:$0xff]  }
  0x50   :  { %5119 = vmatpush3.bf16.msra.mxu1 %v5561_v31  ;;  %5098 = vmatprep.subr.bf16.mxu0 %v5562_v32  ;;  %v5613_v31 = vld [vmem:[%s7425_s22 + $0x230] sm:$0xff]   ;;  %v5614_v32 = vld [vmem:[%s7425_s22 + $0x1f8] sm:$0xff]  }
  0x51   :  { %5120 = vmatprep.subr.bf16.mxu1 %v5564_v34  ;;  %v5616_v34 = vld [vmem:[%s7425_s22 + $0x278] sm:$0xff]  }
  0x53   :  { %5099 = vmatpush3.bf16.msra.mxu0 %v5563_v33  ;;  %v5615_v33 = vld [vmem:[%s7425_s22 + $0x1b8] sm:$0xff]  }
  0x54   :  { %5121 = vmatpush3.bf16.msra.mxu1 %v5565_v35  ;;  %5100 = vmatprep.subr.bf16.mxu0 %v5566_v36  ;;  %v70_v35 = vld [vmem:[%s7426_s30 + $0x38] sm:$0xff] }
  0x55   :  { %5122 = vmatprep.subr.bf16.mxu1 %v5568_v38  ;;  %v86_v36 = vld [vmem:[%s7426_s30 + $0xb8] sm:$0xff] }
  0x56   :  { %v5617_v38 = vld [vmem:[%s7425_s22 + $0x238] sm:$0xff]  }
  0x57   :  { %5101 = vmatpush3.bf16.msra.mxu0 %v5567_v37  ;;  %v102_v37 = vpack.c.bf16 %v86_v36, %v70_v35  ;;  %v5657_v35 = vld [vmem:[%s7425_s22 + $0x398] sm:$0xff]   ;;  %v5658_v36 = vld [vmem:[%s7425_s22 + $0x3e0] sm:$0xff]  }
  0x58   :  { %5123 = vmatpush3.bf16.msra.mxu1 %v5569_v39  ;;  %5102 = vmatprep.subr.bf16.mxu0 %v5570_v40  ;;  %v69_v39 = vld [vmem:[%s7426_s30 + $0x30] sm:$0xff] }
  0x59   :  { %5124 = vmatprep.subr.bf16.mxu1 %v5572_v42  ;;  %v85_v40 = vld [vmem:[%s7426_s30 + $0xb0] sm:$0xff]  ;;  %v5618_v42 = vld [vmem:[%s7425_s22 + $0x2c0] sm:$0xff]  }
  0x5b   :  { %5103 = vmatpush3.bf16.msra.mxu0 %v5571_v41  ;;  %v101_v41 = vpack.c.bf16 %v85_v40, %v69_v39  ;;  %v78_v39 = vld [vmem:[%s7426_s30 + $0x78] sm:$0xff] }
  0x5c   :  { %5125 = vmatpush3.bf16.msra.mxu1 %v5573_v43  ;;  %5104 = vmatprep.subr.bf16.mxu0 %v5574_v44  ;;  %v72_v43 = vld [vmem:[%s7426_s30 + $0x48] sm:$0xff]  ;;  %v94_v40 = vld [vmem:[%s7426_s30 + $0xf8] sm:$0xff] }
  0x5d   :  { %5126 = vmatprep.subr.bf16.mxu1 %v5576_v46  ;;  %v88_v44 = vld [vmem:[%s7426_s30 + $0xc8] sm:$0xff]  ;;  %v5619_v46 = vld [vmem:[%s7425_s22 + $0x280] sm:$0xff]  }
  0x5f   :  { %5105 = vmatpush3.bf16.msra.mxu0 %v5575_v45  ;;  %v104_v45 = vpack.c.bf16 %v88_v44, %v72_v43  ;;  %v5662_v43 = vld [vmem:[%s7425_s22 + $0x3f0] sm:$0xff]  }
  0x60   :  { %5127 = vmatpush3.bf16.msra.mxu1 %v5577_v47  ;;  %5106 = vmatprep.subr.bf16.mxu0 %v5578_v48  ;;  %v71_v47 = vld [vmem:[%s7426_s30 + $0x40] sm:$0xff]  ;;  %v5663_v44 = vld [vmem:[%s7425_s22 + $0x3b0] sm:$0xff]  }
  0x61   :  { %5128 = vmatprep.subr.bf16.mxu1 %v5580_v50  ;;  %v87_v48 = vld [vmem:[%s7426_s30 + $0xc0] sm:$0xff] }
  0x62   :  { %v5620_v50 = vld [vmem:[%s7425_s22 + $0x340] sm:$0xff]  }
  0x63   :  { %5107 = vmatpush3.bf16.msra.mxu0 %v5579_v49  ;;  %v103_v49 = vpack.c.bf16 %v87_v48, %v71_v47  ;;  %v77_v47 = vld [vmem:[%s7426_s30 + $0x70] sm:$0xff] }
  0x64   :  { %5129 = vmatpush3.bf16.msra.mxu1 %v5581_v51  ;;  %5108 = vmatprep.subr.bf16.mxu0 %v5582_v52  ;;  %v5621_v51 = vld [vmem:[%s7425_s22 + $0x300] sm:$0xff]   ;;  %v5622_v52 = vld [vmem:[%s7425_s22 + $0x2c8] sm:$0xff]   ;;  %v93_v48 = vld [vmem:[%s7426_s30 + $0xf0] sm:$0xff] }
  0x65   :  { %5130 = vmatprep.subr.bf16.mxu1 %v5584_v54  ;;  %v5624_v54 = vld [vmem:[%s7425_s22 + $0x348] sm:$0xff]  }
  0x67   :  { %5109 = vmatpush3.bf16.msra.mxu0 %v5583_v53  ;;  %v5623_v53 = vld [vmem:[%s7425_s22 + $0x288] sm:$0xff]  }
  0x68   :  { %5131 = vmatpush3.bf16.msra.mxu1 %v5585_v58  ;;  %5138 = vmatprep.subr.bf16.mxu0 %v5586_v62  ;;  %v5628_v58 = vld [vmem:[%s7425_s22 + $0x350] sm:$0xff]   ;;  %v5632_v62 = vld [vmem:[%s7425_s22 + $0x358] sm:$0xff]  }
  0x69   :  { %5160 = vmatprep.subr.bf16.mxu1 %v5588_v6  ;;  %v5640_v6 = vld [vmem:[%s7425_s22 + $0x368] sm:$0xff]  }
  0x6a   :  { %1734 = vmatmul.mubr.bf16.vlgmr.msra.gmra.mrb[8].mxu0 %v97_v61  ;;  %v5631_v61 = vld [vmem:[%s7425_s22 + $0x298] sm:$0xff]  }
  0x6b   :  { %5139 = vmatpush3.bf16.msra.mxu0 %v5587_v2  ;;  %1775 = vmatmul.mubr.bf16.vlgmr.msra.gmra.mrb[8].mxu1 %v99_v5  ;;  %v5636_v2 = vld [vmem:[%s7425_s22 + $0x360] sm:$0xff]   ;;  %v5639_v5 = vld [vmem:[%s7425_s22 + $0x2a8] sm:$0xff]  }
  0x6c   :  { %5161 = vmatpush3.bf16.msra.mxu1 %v5589_v7  ;;  %5140 = vmatprep.subr.bf16.mxu0 %v5590_v8  ;;  %v5641_v7 = vld [vmem:[%s7425_s22 + $0x328] sm:$0xff]   ;;  %v5642_v8 = vld [vmem:[%s7425_s22 + $0x2f0] sm:$0xff]  }
  0x6d   :  { %5162 = vmatprep.subr.bf16.mxu1 %v5592_v10  ;;  %1815 = vmatprep.mubr.bf16.mxu0 %v102_v37  ;;  %v5644_v10 = vld [vmem:[%s7425_s22 + $0x370] sm:$0xff]   ;;  %v5659_v37 = vld [vmem:[%s7425_s22 + $0x3a0] sm:$0xff]  }
  0x6e   :  { %1856 = vmatprep.mubr.bf16.mxu1 %v104_v45  ;;  %v5664_v45 = vld [vmem:[%s7425_s22 + $0x3f8] sm:$0xff]  }
  0x6f   :  { %5141 = vmatpush3.bf16.msra.mxu0 %v5591_v9  ;;  %v5643_v9 = vld [vmem:[%s7425_s22 + $0x2b0] sm:$0xff]  }
  0x70   :  { %5163 = vmatpush3.bf16.msra.mxu1 %v5593_v11  ;;  %5142 = vmatprep.subr.bf16.mxu0 %v5594_v12  ;;  %v5645_v11 = vld [vmem:[%s7425_s22 + $0x330] sm:$0xff]   ;;  %v5646_v12 = vld [vmem:[%s7425_s22 + $0x2f8] sm:$0xff]  }
  0x71   :  { %5164 = vmatprep.subr.bf16.mxu1 %v5596_v14  ;;  %v5648_v14 = vld [vmem:[%s7425_s22 + $0x378] sm:$0xff]  }
  0x73   :  { %5143 = vmatpush3.bf16.msra.mxu0 %v5595_v13  ;;  %v5647_v13 = vld [vmem:[%s7425_s22 + $0x2b8] sm:$0xff]  }
  0x74   :  { %5165 = vmatpush3.bf16.msra.mxu1 %v5597_v15  ;;  %5144 = vmatprep.subr.bf16.mxu0 %v5598_v16  ;;  %v74_v15 = vld [vmem:[%s7426_s30 + $0x58] sm:$0xff] }
  0x75   :  { %5166 = vmatprep.subr.bf16.mxu1 %v5600_v18  ;;  %v90_v16 = vld [vmem:[%s7426_s30 + $0xd8] sm:$0xff] }
  0x76   :  { %v5649_v18 = vld [vmem:[%s7425_s22 + $0x338] sm:$0xff]  }
  0x77   :  { %5145 = vmatpush3.bf16.msra.mxu0 %v5599_v17  ;;  %v106_v17 = vpack.c.bf16 %v90_v16, %v74_v15 }
  0x78   :  { %5167 = vmatpush3.bf16.msra.mxu1 %v5601_v19  ;;  %5146 = vmatprep.subr.bf16.mxu0 %v5602_v20  ;;  %v73_v19 = vld [vmem:[%s7426_s30 + $0x50] sm:$0xff] }
  0x79   :  { %5168 = vmatprep.subr.bf16.mxu1 %v5604_v22  ;;  %v89_v20 = vld [vmem:[%s7426_s30 + $0xd0] sm:$0xff]  ;;  %v5650_v22 = vld [vmem:[%s7425_s22 + $0x3c0] sm:$0xff]  }
  0x7b   :  { %5147 = vmatpush3.bf16.msra.mxu0 %v5603_v21  ;;  %v105_v21 = vpack.c.bf16 %v89_v20, %v73_v19  ;;  %v5668_v19 = vld [vmem:[%s7399_s5 + $0x10] sm:$0xff]   ;;  %v5669_v20 = vld [vmem:[%s7399_s5 + $0x18] sm:$0xff]  }
  0x7c   :  { %5169 = vmatpush3.bf16.msra.mxu1 %v5605_v23  ;;  %5148 = vmatprep.subr.bf16.mxu0 %v5606_v24  ;;  %v76_v23 = vld [vmem:[%s7426_s30 + $0x68] sm:$0xff] }
  0x7d   :  { %5170 = vmatprep.subr.bf16.mxu1 %v5608_v26  ;;  %v92_v24 = vld [vmem:[%s7426_s30 + $0xe8] sm:$0xff]  ;;  %v5651_v26 = vld [vmem:[%s7425_s22 + $0x380] sm:$0xff]  }
  0x7f   :  { %5149 = vmatpush3.bf16.msra.mxu0 %v5607_v25  ;;  %v108_v25 = vpack.c.bf16 %v92_v24, %v76_v23 }
  0x80   :  { %5171 = vmatpush3.bf16.msra.mxu1 %v5609_v27  ;;  %5150 = vmatprep.subr.bf16.mxu0 %v5610_v28  ;;  %v75_v27 = vld [vmem:[%s7426_s30 + $0x60] sm:$0xff] }
  0x81   :  { %5172 = vmatprep.subr.bf16.mxu1 %v5612_v30  ;;  %v91_v28 = vld [vmem:[%s7426_s30 + $0xe0] sm:$0xff]  ;;  %v5652_v30 = vld [vmem:[%s7425_s22 + $0x3c8] sm:$0xff]  }
  0x83   :  { %5151 = vmatpush3.bf16.msra.mxu0 %v5611_v29  ;;  %v107_v29 = vpack.c.bf16 %v91_v28, %v75_v27 }
  0x84   :  { %5173 = vmatpush3.bf16.msra.mxu1 %v5613_v31  ;;  %5152 = vmatprep.subr.bf16.mxu0 %v5614_v32  ;;  %v5653_v31 = vld [vmem:[%s7425_s22 + $0x388] sm:$0xff]   ;;  %v5654_v32 = vld [vmem:[%s7425_s22 + $0x3d0] sm:$0xff]  }
  0x85   :  { %5174 = vmatprep.subr.bf16.mxu1 %v5616_v34  ;;  %v5656_v34 = vld [vmem:[%s7425_s22 + $0x3d8] sm:$0xff]  }
  0x87   :  { %5153 = vmatpush3.bf16.msra.mxu0 %v5615_v33  ;;  %v5655_v33 = vld [vmem:[%s7425_s22 + $0x390] sm:$0xff]  }
  0x88   :  { %5175 = vmatpush3.bf16.msra.mxu1 %v5617_v38  ;;  %5182 = vmatprep.subr.bf16.mxu0 %v5618_v42  ;;  %v5660_v38 = vld [vmem:[%s7425_s22 + $0x3e8] sm:$0xff]  }
  0x89   :  { %5204 = vmatprep.subr.bf16.mxu1 %v5620_v50  ;;  %v5661_v42 = vld [vmem:[%s7425_s22 + $0x3a8] sm:$0xff]  }
  0x8a   :  { %1816 = vmatmul.mubr.bf16.vlgmr.msra.gmra.mrb[12].mxu0 %v101_v41  ;;  %v110_v41 = vpack.c.bf16 %v94_v40, %v78_v39 }
  0x8b   :  { %5183 = vmatpush3.bf16.msra.mxu0 %v5619_v46  ;;  %1857 = vmatmul.mubr.bf16.vlgmr.msra.gmra.mrb[12].mxu1 %v103_v49  ;;  %v5665_v46 = vld [vmem:[%s7425_s22 + $0x3b8] sm:$0xff]   ;;  %v109_v49 = vpack.c.bf16 %v93_v48, %v77_v47 }
  0x8c   :  { %5205 = vmatpush3.bf16.msra.mxu1 %v5621_v51  ;;  %5184 = vmatprep.subr.bf16.mxu0 %v5622_v52 }
  0x8d   :  { %5206 = vmatprep.subr.bf16.mxu1 %v5624_v54  ;;  %1897 = vmatprep.mubr.bf16.mxu0 %v106_v17 }
  0x8e   :  { %1938 = vmatprep.mubr.bf16.mxu1 %v108_v25 }
  0x8f   :  { %5185 = vmatpush3.bf16.msra.mxu0 %v5623_v53 }
  0x90   :  { %5207 = vmatpush3.bf16.msra.mxu1 %v5625_v55  ;;  %5186 = vmatprep.subr.bf16.mxu0 %v5626_v56 }
  0x91   :  { %5208 = vmatprep.subr.bf16.mxu1 %v5628_v58 }
  0x93   :  { %5187 = vmatpush3.bf16.msra.mxu0 %v5627_v57 }
  0x94   :  { %5209 = vmatpush3.bf16.msra.mxu1 %v5629_v59  ;;  %5188 = vmatprep.subr.bf16.mxu0 %v5630_v60 }
  0x95   :  { %5210 = vmatprep.subr.bf16.mxu1 %v5632_v62 }
  0x97   :  { %5189 = vmatpush3.bf16.msra.mxu0 %v5631_v61 }
  0x98   :  { %5211 = vmatpush3.bf16.msra.mxu1 %v5633_v63  ;;  %5190 = vmatprep.subr.bf16.mxu0 %v5634_v0  ;;  %v5818_v0 = vmov 0.0  }
  0x99   :  { %5212 = vmatprep.subr.bf16.mxu1 %v5636_v2 }
  0x9b   :  { %5191 = vmatpush3.bf16.msra.mxu0 %v5635_v1  ;;  %v5666_v1 = vld [vmem:[%s7399_s5] sm:$0xff]  }
  0x9c   :  { %5213 = vmatpush3.bf16.msra.mxu1 %v5637_v3  ;;  %5192 = vmatprep.subr.bf16.mxu0 %v5638_v4 }
  0x9d   :  { %5214 = vmatprep.subr.bf16.mxu1 %v5640_v6 }
  0x9f   :  { %5193 = vmatpush3.bf16.msra.mxu0 %v5639_v5 }
  0xa0   :  { %5215 = vmatpush3.bf16.msra.mxu1 %v5641_v7  ;;  %5194 = vmatprep.subr.bf16.mxu0 %v5642_v8 }
  0xa1   :  { %5216 = vmatprep.subr.bf16.mxu1 %v5644_v10 }
  0xa3   :  { %5195 = vmatpush3.bf16.msra.mxu0 %v5643_v9 }
  0xa4   :  { %5217 = vmatpush3.bf16.msra.mxu1 %v5645_v11  ;;  %5196 = vmatprep.subr.bf16.mxu0 %v5646_v12 }
  0xa5   :  { %5218 = vmatprep.subr.bf16.mxu1 %v5648_v14 }
  0xa7   :  { %5197 = vmatpush3.bf16.msra.mxu0 %v5647_v13 }
  0xa8   :  { %5219 = vmatpush3.bf16.msra.mxu1 %v5649_v18  ;;  %5226 = vmatprep.subr.bf16.mxu0 %v5650_v22  ;;  %v5667_v18 = vld [vmem:[%s7399_s5 + $0x8] sm:$0xff]  }
  0xa9   :  { %5443 = vmatprep.subr.bf16.mxu1 %v5818_v0 }
  0xaa   :  { %1898 = vmatmul.mubr.bf16.vlgmr.msra.gmra.mrb[16].mxu0 %v105_v21 }
  0xab   :  { %5227 = vmatpush3.bf16.msra.mxu0 %v5651_v26  ;;  %1939 = vmatmul.mubr.bf16.vlgmr.msra.gmra.mrb[16].mxu1 %v107_v29 }
  0xac   :  { %5228 = vmatprep.subr.bf16.mxu0 %v5652_v30  ;;  %1979 = vmatprep.mubr.bf16.mxu0 %v110_v41 }
  0xad   :  { %5444 = vmatpush3.bf16.msra.mxu1 %v5666_v1  ;;  %5451 = vmatprep.mubr.msk.bf16.mxu1 %vm5819_vm0, %v5818_v0 }
  0xae   :  { %5445 = vmatprep.subr.bf16.mxu1 %v5818_v0 }
  0xaf   :  { %5229 = vmatpush3.bf16.msra.mxu0 %v5653_v31 }
  0xb0   :  { %5230 = vmatprep.subr.bf16.mxu0 %v5654_v32 }
  0xb1   :  { %5446 = vmatpush3.bf16.msra.mxu1 %v5667_v18 }
  0xb2   :  { %5447 = vmatprep.subr.bf16.mxu1 %v5818_v0 }
  0xb3   :  { %5231 = vmatpush3.bf16.msra.mxu0 %v5655_v33 }
  0xb4   :  { %5232 = vmatprep.subr.bf16.mxu0 %v5656_v34 }
  0xb5   :  { %5448 = vmatpush3.bf16.msra.mxu1 %v5668_v19 }
  0xb6   :  { %5449 = vmatprep.subr.bf16.mxu1 %v5818_v0 }
  0xb7   :  { %5233 = vmatpush3.bf16.msra.mxu0 %v5657_v35 }
  0xb8   :  { %5234 = vmatprep.subr.bf16.mxu0 %v5658_v36 }
  0xb9   :  { %5450 = vmatpush3.bf16.msra.mxu1 %v5669_v20  ;;  %v4780_v20 = vld [vmem:[%s7401_s6] ss:$0 sm:$0xff] }
  0xbb   :  { %5235 = vmatpush3.bf16.msra.mxu0 %v5659_v37 }
  0xbc   :  { %5236 = vmatprep.subr.bf16.mxu0 %v5660_v38 }
  0xbf   :  { %5237 = vmatpush3.bf16.msra.mxu0 %v5661_v42 }
  0xc0   :  { %5238 = vmatprep.subr.bf16.mxu0 %v5662_v43 }
  0xc3   :  { %5239 = vmatpush3.bf16.msra.mxu0 %v5663_v44 }
  0xc4   :  { %5240 = vmatprep.subr.bf16.mxu0 %v5664_v45 }
  0xc7   :  { %5241 = vmatpush3.bf16.msra.mxu0 %v5665_v46 }
  0xca   :  { %1980 = vmatmul.mubr.bf16.vlgmr.msra.gmra.mrb[20].mxu0 %v109_v49 }
  0xfd   :  { %v5022_v50 = vpop.f32.mrb[0].mxu0 }
  0xfe   :  { %v5044_v51 = vpop.f32.mrb[0].mxu1  ;;  %v5023_v52 = vpop.f32.mrb[1].mxu0 }
  0xff   :  { %v5024_v53 = vadd.f32 %v5023_v52, %v5022_v50  ;;  %v5045_v54 = vpop.f32.mrb[1].mxu1  ;;  %v5025_v55 = vpop.f32.mrb[2].mxu0 }
 0x100   :  { %v5046_v56 = vadd.f32 %v5045_v54, %v5044_v51  ;;  %v5047_v57 = vpop.f32.mrb[2].mxu1  ;;  %v5026_v58 = vpop.f32.mrb[3].mxu0 }
 0x101   :  { %v5027_v59 = vadd.f32 %v5026_v58, %v5025_v55  ;;  %v5048_v60 = vpop.f32.mrb[3].mxu1 }
 0x102   :  { %v845_v61 = vadd.f32 %v5046_v56, %v5024_v53  ;;  %v5049_v62 = vadd.f32 %v5048_v60, %v5047_v57 }
 0x104   :  { %v848_v63 = vadd.f32 %v5049_v62, %v5027_v59 }
 0x11d   :  { %v5066_v2 = vpop.f32.mrb[4].mxu0 }
 0x11e   :  { %v5067_v3 = vpop.f32.mrb[5].mxu0  ;;  %v5088_v8 = vpop.f32.mrb[4].mxu1 }
 0x11f   :  { %v5068_v4 = vadd.f32 %v5067_v3, %v5066_v2  ;;  %v5069_v5 = vpop.f32.mrb[6].mxu0  ;;  %v5089_v10 = vpop.f32.mrb[5].mxu1 }
 0x120   :  { %v5070_v6 = vpop.f32.mrb[7].mxu0  ;;  %v5090_v12 = vadd.f32 %v5089_v10, %v5088_v8  ;;  %v5091_v13 = vpop.f32.mrb[6].mxu1  ;;  %v4779_v10 = vld [vmem:[%s7400_s4] ss:$0 sm:$0xff] }
 0x121   :  { %v886_v7 = vadd.f32 %v5068_v4, %v845_v61  ;;  %v5071_v9 = vadd.f32 %v5070_v6, %v5069_v5  ;;  %v5092_v14 = vpop.f32.mrb[7].mxu1 }
 0x122   :  { %v5093_v16 = vadd.f32 %v5092_v14, %v5091_v13 }
 0x123   :  { %v889_v11 = vadd.f32 %v5071_v9, %v848_v63  ;;  %v1695_v15 = vadd.f32 %v5090_v12, %v886_v7 }
 0x125   :  { %v1698_v17 = vadd.f32 %v5093_v16, %v889_v11 }
 0x13d   :  { %v5110_v21 = vpop.f32.mrb[8].mxu0 }
 0x13e   :  { %v5111_v22 = vpop.f32.mrb[9].mxu0  ;;  %v5132_v25 = vpop.f32.mrb[8].mxu1 }
 0x13f   :  { %v5112_v23 = vadd.f32 %v5111_v22, %v5110_v21  ;;  %v5113_v24 = vpop.f32.mrb[10].mxu0  ;;  %v5133_v29 = vpop.f32.mrb[9].mxu1 }
 0x140   :  { %v5114_v26 = vpop.f32.mrb[11].mxu0  ;;  %v5134_v30 = vadd.f32 %v5133_v29, %v5132_v25  ;;  %v5135_v31 = vpop.f32.mrb[10].mxu1 }
 0x141   :  { %v1736_v27 = vadd.f32 %v5112_v23, %v1695_v15  ;;  %v5115_v28 = vadd.f32 %v5114_v26, %v5113_v24  ;;  %v5136_v33 = vpop.f32.mrb[11].mxu1 }
 0x142   :  { %v5137_v35 = vadd.f32 %v5136_v33, %v5135_v31 }
 0x143   :  { %v1739_v32 = vadd.f32 %v5115_v28, %v1698_v17  ;;  %v1777_v34 = vadd.f32 %v5134_v30, %v1736_v27 }
 0x145   :  { %v1780_v36 = vadd.f32 %v5137_v35, %v1739_v32 }
 0x15d   :  { %v5154_v37 = vpop.f32.mrb[12].mxu0 }
 0x15e   :  { %v5155_v38 = vpop.f32.mrb[13].mxu0  ;;  %v5176_v41 = vpop.f32.mrb[12].mxu1 }
 0x15f   :  { %v5156_v39 = vadd.f32 %v5155_v38, %v5154_v37  ;;  %v5157_v40 = vpop.f32.mrb[14].mxu0  ;;  %v5177_v45 = vpop.f32.mrb[13].mxu1 }
 0x160   :  { %v5158_v42 = vpop.f32.mrb[15].mxu0  ;;  %v5178_v46 = vadd.f32 %v5177_v45, %v5176_v41  ;;  %v5179_v47 = vpop.f32.mrb[14].mxu1  ;;  %v2133_v41 = vld [vmem:[%s7402_s9 + $0x18] sm:$0xff] }
 0x161   :  { %v1818_v43 = vadd.f32 %v5156_v39, %v1777_v34  ;;  %v5159_v44 = vadd.f32 %v5158_v42, %v5157_v40  ;;  %v5180_v49 = vpop.f32.mrb[15].mxu1  ;;  %v2130_v39 = vld [vmem:[%s7402_s9] sm:$0xff] }
 0x162   :  { %v5181_v51 = vadd.f32 %v5180_v49, %v5179_v47  ;;  %v2138_v40 = vld [vmem:[%s7402_s9 + $0x40] sm:$0xff]  ;;  %v2149_v49 = vld [vmem:[%s7402_s9 + $0x98] sm:$0xff] }
 0x163   :  { %v1821_v48 = vadd.f32 %v5159_v44, %v1780_v36  ;;  %v1859_v50 = vadd.f32 %v5178_v46, %v1818_v43  ;;  %v4789_v42 = vcombine.high %v2130_v39, %v2138_v40  ;;  %v2141_v43 = vld [vmem:[%s7402_s9 + $0x58] sm:$0xff]  ;;  %v4788_v44 = vcombine.low %v2130_v39, %v2138_v40  ;;  %v2146_v47 = vld [vmem:[%s7402_s9 + $0x80] sm:$0xff]  ;;  %v2167_v39 = vld [vmem:[%s7402_s9 + $0x128] sm:$0xff] }
 0x164   :  { %v4794_v45 = vcombine.low %v2133_v41, %v2141_v43  ;;  %v4795_v46 = vcombine.high %v2133_v41, %v2141_v43  ;;  %v2175_v40 = vld [vmem:[%s7402_s9 + $0x168] sm:$0xff] }
 0x165   :  { %v1862_v52 = vadd.f32 %v5181_v51, %v1821_v48  ;;  %2601 = vmatprep.subr.bf16.mxu1 %v4789_v42  ;;  %v2154_v48 = vld [vmem:[%s7402_s9 + $0xc0] sm:$0xff]  ;;  %v2157_v51 = vld [vmem:[%s7402_s9 + $0xd8] sm:$0xff] }
 0x166   :  { %2730 = vmatprep.subr.bf16.mxu0 %v4795_v46  ;;  %v2179_v46 = vld [vmem:[%s7402_s9 + $0x188] sm:$0xff] }
 0x167   :  { %2731 = vmatpush1.bf16.msra.mxu0 %v4794_v45 }
 0x17d   :  { %v5198_v53 = vpop.f32.mrb[16].mxu0 }
 0x17e   :  { %v5199_v54 = vpop.f32.mrb[17].mxu0  ;;  %v5220_v59 = vpop.f32.mrb[16].mxu1 }
 0x17f   :  { %v5200_v55 = vadd.f32 %v5199_v54, %v5198_v53  ;;  %v5201_v56 = vpop.f32.mrb[18].mxu0  ;;  %v5221_v61 = vpop.f32.mrb[17].mxu1  ;;  %v4810_v53 = vcombine.low %v2149_v49, %v2157_v51  ;;  %v4811_v54 = vcombine.high %v2149_v49, %v2157_v51  ;;  %v2191_v49 = vld [vmem:[%s7402_s9 + $0x1e8] sm:$0xff]  ;;  %v4831_v51 = vcombine.high %v2167_v39, %v2175_v40 }
 0x180   :  { %v5202_v57 = vpop.f32.mrb[19].mxu0  ;;  %v5222_v63 = vadd.f32 %v5221_v61, %v5220_v59  ;;  %v5223_v1 = vpop.f32.mrb[18].mxu1  ;;  %v2173_v59 = vld [vmem:[%s7402_s9 + $0x158] sm:$0xff] }
 0x181   :  { %v1900_v58 = vadd.f32 %v5200_v55, %v1859_v50  ;;  %v5203_v60 = vadd.f32 %v5202_v57, %v5201_v56  ;;  %v5224_v2 = vpop.f32.mrb[19].mxu1  ;;  %v4805_v50 = vcombine.high %v2146_v47, %v2154_v48  ;;  %2732 = vmatprep.subr.bf16.mxu0 %v4811_v54  ;;  %v2162_v55 = vld [vmem:[%s7402_s9 + $0x100] sm:$0xff]  ;;  %v2165_v57 = vld [vmem:[%s7402_s9 + $0x118] sm:$0xff]  ;;  %v2132_v54 = vld [vmem:[%s7402_s9 + $0x10] sm:$0xff] }
 0x182   :  { %v5225_v4 = vadd.f32 %v5224_v2, %v5223_v1  ;;  %v2170_v56 = vld [vmem:[%s7402_s9 + $0x140] sm:$0xff]  ;;  %2733 = vmatpush1.bf16.msra.mxu0 %v4810_v53  ;;  %v4826_v61 = vcombine.low %v2165_v57, %v2173_v59  ;;  %v2181_v2 = vld [vmem:[%s7402_s9 + $0x198] sm:$0xff]  ;;  %v4830_v53 = vcombine.low %v2167_v39, %v2175_v40 }
 0x183   :  { %v1903_v62 = vadd.f32 %v5203_v60, %v1862_v52  ;;  %v1941_v3 = vadd.f32 %v5222_v63, %v1900_v58  ;;  %v4804_v52 = vcombine.low %v2146_v47, %v2154_v48  ;;  %v4821_v58 = vcombine.high %v2162_v55, %v2170_v56  ;;  %v2178_v63 = vld [vmem:[%s7402_s9 + $0x180] sm:$0xff]  ;;  %v2187_v47 = vld [vmem:[%s7402_s9 + $0x1c8] sm:$0xff] }
 0x184   :  { %v4820_v60 = vcombine.low %v2162_v55, %v2170_v56  ;;  %v2186_v1 = vld [vmem:[%s7402_s9 + $0x1c0] sm:$0xff]  ;;  %v2183_v48 = vld [vmem:[%s7402_s9 + $0x1a8] sm:$0xff]  ;;  %v2140_v55 = vld [vmem:[%s7402_s9 + $0x50] sm:$0xff] }
 0x185   :  { %v1944_v5 = vadd.f32 %v5225_v4, %v1903_v62  ;;  %v4827_v62 = vcombine.high %v2165_v57, %v2173_v59  ;;  %v2189_v4 = vld [vmem:[%s7402_s9 + $0x1d8] sm:$0xff]  ;;  %v4847_v59 = vcombine.high %v2183_v48, %v2191_v49  ;;  %v2166_v39 = vld [vmem:[%s7402_s9 + $0x120] sm:$0xff] }
 0x186   :  { %v2137_v56 = vld [vmem:[%s7402_s9 + $0x38] sm:$0xff]  ;;  %v2174_v40 = vld [vmem:[%s7402_s9 + $0x160] sm:$0xff] }
 0x187   :  { %2734 = vmatprep.subr.bf16.mxu0 %v4827_v62  ;;  %v2145_v57 = vld [vmem:[%s7402_s9 + $0x78] sm:$0xff]  ;;  %v2148_v62 = vld [vmem:[%s7402_s9 + $0x90] sm:$0xff] }
 0x188   :  { %2735 = vmatpush1.bf16.msra.mxu0 %v4826_v61  ;;  %v4846_v61 = vcombine.low %v2183_v48, %v2191_v49  ;;  %v4828_v48 = vcombine.low %v2166_v39, %v2174_v40 }
 0x19d   :  { %v5242_v6 = vpop.f32.mrb[20].mxu0 }
 0x19e   :  { %v5243_v7 = vpop.f32.mrb[21].mxu0 }
 0x19f   :  { %v5244_v8 = vadd.f32 %v5243_v7, %v5242_v6  ;;  %v5245_v9 = vpop.f32.mrb[22].mxu0  ;;  %v4842_v6 = vcombine.low %v2181_v2, %v2189_v4  ;;  %v4843_v7 = vcombine.high %v2181_v2, %v2189_v4  ;;  %v2161_v2 = vld [vmem:[%s7402_s9 + $0xf8] sm:$0xff]  ;;  %v4803_v4 = vcombine.high %v2137_v56, %v2145_v57 }
 0x1a0   :  { %v5246_v11 = vpop.f32.mrb[23].mxu0 }
 0x1a1   :  { %v1982_v12 = vadd.f32 %v5244_v8, %v1941_v3  ;;  %v5247_v13 = vadd.f32 %v5246_v11, %v5245_v9  ;;  %v4837_v3 = vcombine.high %v2178_v63, %v2186_v1  ;;  %2736 = vmatprep.subr.bf16.mxu0 %v4843_v7  ;;  %v2131_v8 = vld [vmem:[%s7402_s9 + $0x8] sm:$0xff]  ;;  %v2164_v7 = vld [vmem:[%s7402_s9 + $0x110] sm:$0xff] }
 0x1a2   :  { %v2139_v9 = vld [vmem:[%s7402_s9 + $0x48] sm:$0xff]  ;;  %2737 = vmatpush1.bf16.msra.mxu0 %v4842_v6  ;;  %v4802_v6 = vcombine.low %v2137_v56, %v2145_v57 }
 0x1a3   :  { %v1995_v14 = vadd.f32 %v4779_v10, %v1982_v12  ;;  %v1985_v15 = vadd.f32 %v5247_v13, %v1944_v5  ;;  %v4836_v5 = vcombine.low %v2178_v63, %v2186_v1  ;;  %v4790_v11 = vcombine.low %v2131_v8, %v2139_v9  ;;  %v2143_v13 = vld [vmem:[%s7402_s9 + $0x68] sm:$0xff]  ;;  %v2156_v63 = vld [vmem:[%s7402_s9 + $0xd0] sm:$0xff]  ;;  %v2153_v1 = vld [vmem:[%s7402_s9 + $0xb8] sm:$0xff] }
 0x1a4   :  { %v4791_v12 = vcombine.high %v2131_v8, %v2139_v9  ;;  %v2172_v8 = vld [vmem:[%s7402_s9 + $0x150] sm:$0xff]  ;;  %v2169_v9 = vld [vmem:[%s7402_s9 + $0x138] sm:$0xff] }
 0x1a5   :  { %v1996_v16 = vadd.f32 %v4779_v10, %v1985_v15  ;;  %v1997_v17 = vmax.f32 %v1995_v14, 0.0  ;;  %v2135_v10 = vld [vmem:[%s7402_s9 + $0x28] sm:$0xff]  ;;  %v5820_v14 = vmov 0  }
 0x1a6   :  { %2762 = vmatprep.mubr.bf16.mxu0 %v5820_v14  ;;  %v4798_v15 = vcombine.low %v2135_v10, %v2143_v13 }
 0x1a7   :  { %v1998_v18 = vmax.f32 %v1996_v16, 0.0  ;;  %v4799_v16 = vcombine.high %v2135_v10, %v2143_v13  ;;  %v2177_v10 = vld [vmem:[%s7402_s9 + $0x178] sm:$0xff]  ;;  %v4808_v13 = vcombine.low %v2148_v62, %v2156_v63 }
 0x1a9   :  { %v1999_v19 = vpack.c.bf16 %v1998_v18, %v1997_v17  ;;  %2816 = vmatprep.subr.bf16.mxu0 %v4799_v16  ;;  %v2180_v16 = vld [vmem:[%s7402_s9 + $0x190] sm:$0xff] }
 0x1ab   :  { %5452 = vmatmul.mubr.msk.bf16.vlgmr.msra.gmra.mrb[20].mxu1 %vm2039_vm1, %v1999_v19 }
 0x1ac   :  { %2602 = vmatpush1.bf16.msra.mxu1 %v4788_v44  ;;  %2633 = vmatprep.mubr.bf16.mxu1 %v5820_v14 }
 0x1ad   :  { %2603 = vmatprep.subr.bf16.mxu1 %v4805_v50 }
 0x1b0   :  { %2604 = vmatpush1.bf16.msra.mxu1 %v4804_v52 }
 0x1b1   :  { %2605 = vmatprep.subr.bf16.mxu1 %v4821_v58  ;;  %v4839_v58 = vcombine.high %v2179_v46, %v2187_v47 }
 0x1b4   :  { %2606 = vmatpush1.bf16.msra.mxu1 %v4820_v60  ;;  %v4838_v60 = vcombine.low %v2179_v46, %v2187_v47  ;;  %v2182_v46 = vld [vmem:[%s7402_s9 + $0x1a0] sm:$0xff] }
 0x1b5   :  { %2607 = vmatprep.subr.bf16.mxu1 %v4837_v3  ;;  %v4793_v3 = vcombine.high %v2132_v54, %v2140_v55  ;;  %v2190_v47 = vld [vmem:[%s7402_s9 + $0x1e0] sm:$0xff] }
 0x1b6   :  { %v4845_v49 = vcombine.high %v2182_v46, %v2190_v47 }
 0x1b8   :  { %2608 = vmatpush1.bf16.msra.mxu1 %v4836_v5  ;;  %v4792_v5 = vcombine.low %v2132_v54, %v2140_v55  ;;  %v2152_v54 = vld [vmem:[%s7402_s9 + $0xb0] sm:$0xff] }
 0x1b9   :  { %2644 = vmatprep.subr.bf16.mxu1 %v4791_v12  ;;  %v4819_v12 = vcombine.high %v2153_v1, %v2161_v2  ;;  %v2160_v55 = vld [vmem:[%s7402_s9 + $0xf0] sm:$0xff] }
 0x1ba   :  { %v4817_v57 = vcombine.high %v2152_v54, %v2160_v55 }
 0x27e   :  { %v2077_v21 = vpop.f32.mrb[20].mxu1 }
 0x27f   :  { %v2078_v22 = vadd.f32 %v4780_v20, %v2077_v21  ;;  %v5453_v23 = vpop.f32.mrb[21].mxu1 }
 0x280   :  { %v2080_v24 = vpop.f32.mrb[22].mxu1 }
 0x281   :  { %v2081_v25 = vadd.f32 %v4780_v20, %v2080_v24  ;;  %v5454_v26 = vpop.f32.mrb[23].mxu1  ;;  %v2086_v27 = vsel %vm2039_vm1, %v2078_v22, 0.0  ;;  %v4786_v24 = vld [vmem:[%s7404_s7] ss:$0 sm:$0xff] }
 0x282   :  { %2087 = vadd.xlane.f32.xlu0 %v2086_v27  ;;  %v4787_v27 = vld [vmem:[%s7405_s8] ss:$0 sm:$0xff] }
 0x283   :  { %v2089_v28 = vsel %vm2039_vm1, %v2081_v25, 0.0 }
 0x286   :  { %2090 = vadd.xlane.f32.xlu0 %v2089_v28 }
 0x30f   :  { %v2088_v29 = vpop.xlane.xlu0 %2087 }
 0x310   :  { %v2093_v30 = vmul.f32 0.015625, %v2088_v29 }
 0x312   :  { %v6608_v31 = vsub.f32 %v2078_v22, %v2093_v30  ;;  %v2147_v30 = vld [vmem:[%s7402_s9 + $0x88] sm:$0xff] }
 0x313   :  { %v2091_v32 = vpop.xlane.xlu0 %2090 }
 0x314   :  { %v2094_v33 = vmul.f32 0.015625, %v2091_v32  ;;  %v2097_v34 = vmul.f32 %v6608_v31, %v6608_v31  ;;  %v2155_v32 = vld [vmem:[%s7402_s9 + $0xc8] sm:$0xff] }
 0x315   :  { %v4807_v42 = vcombine.high %v2147_v30, %v2155_v32  ;;  %v4806_v44 = vcombine.low %v2147_v30, %v2155_v32  ;;  %v2150_v32 = vld [vmem:[%s7402_s9 + $0xa0] sm:$0xff] }
 0x316   :  { %v6612_v35 = vsub.f32 %v2081_v25, %v2094_v33  ;;  %v2099_v36 = vsel %vm2039_vm1, %v2097_v34, 0.0  ;;  %v2159_v33 = vld [vmem:[%s7402_s9 + $0xe8] sm:$0xff] }
 0x317   :  { %2100 = vadd.xlane.f32.xlu1 %v2099_v36 }
 0x318   :  { %v2098_v37 = vmul.f32 %v6612_v35, %v6612_v35 }
 0x31a   :  { %v2102_v38 = vsel %vm2039_vm1, %v2098_v37, 0.0  ;;  %v2163_v37 = vld [vmem:[%s7402_s9 + $0x108] sm:$0xff] }
 0x31b   :  { %2103 = vadd.xlane.f32.xlu1 %v2102_v38  ;;  %v2171_v38 = vld [vmem:[%s7402_s9 + $0x148] sm:$0xff] }
 0x31c   :  { %v4823_v50 = vcombine.high %v2163_v37, %v2171_v38  ;;  %v4822_v52 = vcombine.low %v2163_v37, %v2171_v38  ;;  %v5680_v38 = vld [vmem:[%s7403_s11 + $0x80] sm:$0xff]  }
 0x3a4   :  { %v2101_v17 = vpop.xlane.xlu1 %2100 }
 0x3a5   :  { %v2105_v18 = vmul.f32 0.015625, %v2101_v17  ;;  %v2188_v17 = vld [vmem:[%s7402_s9 + $0x1d0] sm:$0xff] }
 0x3a7   :  { %v2107_v19 = vadd.f32 1e-05, %v2105_v18  ;;  %v2185_v18 = vld [vmem:[%s7402_s9 + $0x1b8] sm:$0xff] }
 0x3a8   :  { %v2104_v20 = vpop.xlane.xlu1 %2103 }
 0x3a9   :  { %5810 = vrsqrt.f32 %v2107_v19  ;;  %v2106_v21 = vmul.f32 0.015625, %v2104_v20  ;;  %v2193_v19 = vld [vmem:[%s7402_s9 + $0x1f8] sm:$0xff]  ;;  %v4825_v20 = vcombine.high %v2164_v7, %v2172_v8 }
 0x3aa   :  { %v4850_v30 = vcombine.low %v2185_v18, %v2193_v19 }
 0x3ab   :  { %v2108_v22 = vadd.f32 1e-05, %v2106_v21  ;;  %v4835_v21 = vcombine.high %v2169_v9, %v2177_v10 }
 0x3ad   :  { %5812 = vrsqrt.f32 %v2108_v22  ;;  %v4824_v22 = vcombine.low %v2164_v7, %v2172_v8  ;;  %v5674_v7 = vld [vmem:[%s7403_s11 + $0x50] sm:$0xff]  }
 0x3ae   :  { %v5675_v8 = vld [vmem:[%s7403_s11 + $0x10] sm:$0xff]  }
 0x3b3   :  { %v5811_v23 = vpop.eup %5810 }
 0x3b4   :  { %v2111_v25 = vmul.f32 %v5811_v23, %v6608_v31  ;;  %v2151_v31 = vld [vmem:[%s7402_s9 + $0xa8] sm:$0xff]  ;;  %v4834_v23 = vcombine.low %v2169_v9, %v2177_v10  ;;  %v5677_v9 = vld [vmem:[%s7403_s11 + $0x18] sm:$0xff]   ;;  %v5679_v10 = vld [vmem:[%s7403_s11 + $0x60] sm:$0xff]  }
 0x3b5   :  { %v4815_v43 = vcombine.high %v2151_v31, %v2159_v33  ;;  %v4814_v45 = vcombine.low %v2151_v31, %v2159_v33  ;;  %v2158_v31 = vld [vmem:[%s7402_s9 + $0xe0] sm:$0xff] }
 0x3b6   :  { %v2119_v28 = vmul.f32 %v4786_v24, %v2111_v25  ;;  %v2142_v25 = vld [vmem:[%s7402_s9 + $0x60] sm:$0xff]  ;;  %v4813_v37 = vcombine.high %v2150_v32, %v2158_v31 }
 0x3b7   :  { %v5813_v26 = vpop.eup %5812 }
 0x3b8   :  { %v2112_v29 = vmul.f32 %v5813_v26, %v6612_v35  ;;  %v6700_v36 = vadd.f32 %v4787_v27, %v2119_v28  ;;  %v4841_v26 = vcombine.high %v2180_v16, %v2188_v17  ;;  %v5678_v28 = vld [vmem:[%s7403_s11 + $0xc0] sm:$0xff]  }
 0x3ba   :  { %v2120_v34 = vmul.f32 %v4786_v24, %v2112_v29  ;;  %v2134_v24 = vld [vmem:[%s7402_s9 + $0x20] sm:$0xff]  ;;  %v4840_v29 = vcombine.low %v2180_v16, %v2188_v17  ;;  %v5687_v16 = vld [vmem:[%s7403_s11 + $0x70] sm:$0xff]  }
 0x3bb   :  { %v4797_v33 = vcombine.high %v2134_v24, %v2142_v25  ;;  %v5688_v17 = vld [vmem:[%s7403_s11 + $0x90] sm:$0xff]  }
 0x3bc   :  { %v6702_v35 = vadd.f32 %v4787_v27, %v2120_v34  ;;  %v4851_v27 = vcombine.high %v2185_v18, %v2193_v19  ;;  %v4796_v34 = vcombine.low %v2134_v24, %v2142_v25  ;;  %v5689_v18 = vld [vmem:[%s7403_s11 + $0x30] sm:$0xff]   ;;  %v5690_v19 = vld [vmem:[%s7403_s11 + $0xd8] sm:$0xff]   ;;  %v5695_v24 = vld [vmem:[%s7403_s11 + $0xa0] sm:$0xff]  }
 0x3bd   :  { %v5696_v25 = vld [vmem:[%s7403_s11 + $0x140] sm:$0xff]  }
 0x3be   :  { %v6718_v41 = vpack.c.bf16 %v6702_v35, %v6700_v36 }
 0x3c0   :  { %4852 = vmatmul.mubr.msk.bf16.vlgmr.msra.gmra.mrb[24].mxu1 %vm2039_vm1, %v6718_v41  ;;  %4855 = vmatmul.mubr.msk.bf16.vlgmr.msra.gmra.mrb[24].mxu0 %vm2039_vm1, %v6718_v41 }
 0x3c1   :  { %2645 = vmatpush1.bf16.msra.mxu1 %v4790_v11  ;;  %2817 = vmatpush1.bf16.msra.mxu0 %v4798_v15  ;;  %v4809_v11 = vcombine.high %v2148_v62, %v2156_v63  ;;  %v4818_v15 = vcombine.low %v2153_v1, %v2161_v2  ;;  %v2184_v62 = vld [vmem:[%s7402_s9 + $0x1b0] sm:$0xff] }
 0x3c2   :  { %2646 = vmatprep.subr.bf16.mxu1 %v4807_v42  ;;  %2818 = vmatprep.subr.bf16.mxu0 %v4815_v43  ;;  %v5682_v42 = vld [vmem:[%s7403_s11 + $0xc8] sm:$0xff]   ;;  %v4812_v43 = vcombine.low %v2150_v32, %v2158_v31  ;;  %v2192_v63 = vld [vmem:[%s7402_s9 + $0x1f0] sm:$0xff]  ;;  %v5707_v32 = vld [vmem:[%s7403_s11 + $0xb8] sm:$0xff]   ;;  %v2198_v31 = vlaneseq }
 0x3c3   :  { %2676 = vmatprep.mubr.bf16.mxu1 %v5820_v14  ;;  %2848 = vmatprep.mubr.bf16.mxu0 %v5820_v14  ;;  %v4849_v2 = vcombine.high %v2184_v62, %v2192_v63 }
 0x3c5   :  { %2647 = vmatpush1.bf16.msra.mxu1 %v4806_v44  ;;  %2819 = vmatpush1.bf16.msra.mxu0 %v4814_v45  ;;  %v4829_v44 = vcombine.high %v2166_v39, %v2174_v40  ;;  %v5684_v45 = vld [vmem:[%s7403_s11 + $0x88] sm:$0xff]  }
 0x3c6   :  { %2648 = vmatprep.subr.bf16.mxu1 %v4823_v50  ;;  %2820 = vmatprep.subr.bf16.mxu0 %v4831_v51  ;;  %v2136_v50 = vld [vmem:[%s7402_s9 + $0x30] sm:$0xff] }
 0x3c7   :  { %v2144_v51 = vld [vmem:[%s7402_s9 + $0x70] sm:$0xff] }
 0x3c8   :  { %v4800_v56 = vcombine.low %v2136_v50, %v2144_v51 }
 0x3c9   :  { %2649 = vmatpush1.bf16.msra.mxu1 %v4822_v52  ;;  %2821 = vmatpush1.bf16.msra.mxu0 %v4830_v53  ;;  %v4844_v52 = vcombine.low %v2182_v46, %v2190_v47  ;;  %v4801_v53 = vcombine.high %v2136_v50, %v2144_v51 }
 0x3ca   :  { %2650 = vmatprep.subr.bf16.mxu1 %v4839_v58  ;;  %2822 = vmatprep.subr.bf16.mxu0 %v4847_v59  ;;  %v2168_v58 = vld [vmem:[%s7402_s9 + $0x130] sm:$0xff] }
 0x3cb   :  { %v2176_v59 = vld [vmem:[%s7402_s9 + $0x170] sm:$0xff] }
 0x3cc   :  { %v4832_v1 = vcombine.low %v2168_v58, %v2176_v59 }
 0x3cd   :  { %2651 = vmatpush1.bf16.msra.mxu1 %v4838_v60  ;;  %2823 = vmatpush1.bf16.msra.mxu0 %v4846_v61  ;;  %v4816_v60 = vcombine.low %v2152_v54, %v2160_v55  ;;  %v4833_v61 = vcombine.high %v2168_v58, %v2176_v59 }
 0x3ce   :  { %2687 = vmatprep.subr.bf16.mxu1 %v4793_v3  ;;  %2902 = vmatprep.subr.bf16.mxu0 %v4803_v4  ;;  %v4848_v3 = vcombine.low %v2184_v62, %v2192_v63  ;;  %v5671_v4 = vld [vmem:[%s7403_s11] sm:$0xff]  }
 0x3d0   :  { %4853 = vmatmul.mubr.msk.bf16.vlgmr.msra.gmra.mrb[28].mxu1 %vm2039_vm1, %v6718_v41  ;;  %4857 = vmatmul.mubr.msk.bf16.vlgmr.msra.gmra.mrb[28].mxu0 %vm2039_vm1, %v6718_v41 }
 0x3d1   :  { %2688 = vmatpush1.bf16.msra.mxu1 %v4792_v5  ;;  %2903 = vmatpush1.bf16.msra.mxu0 %v4802_v6  ;;  %v5672_v5 = vld [vmem:[%s7403_s11 + $0x48] sm:$0xff]  }
 0x3d2   :  { %2689 = vmatprep.subr.bf16.mxu1 %v4809_v11  ;;  %2904 = vmatprep.subr.bf16.mxu0 %v4819_v12  ;;  %v5673_v6 = vld [vmem:[%s7403_s11 + $0x8] sm:$0xff]   ;;  %v5681_v11 = vld [vmem:[%s7403_s11 + $0x20] sm:$0xff]  }
 0x3d3   :  { %2719 = vmatprep.mubr.bf16.mxu1 %v5820_v14  ;;  %2934 = vmatprep.mubr.bf16.mxu0 %v5820_v14  ;;  %v5683_v12 = vld [vmem:[%s7403_s11 + $0x68] sm:$0xff]  }
 0x3d5   :  { %2690 = vmatpush1.bf16.msra.mxu1 %v4808_v13  ;;  %2905 = vmatpush1.bf16.msra.mxu0 %v4818_v15  ;;  %v5685_v13 = vld [vmem:[%s7403_s11 + $0x28] sm:$0xff]   ;;  %v5686_v15 = vld [vmem:[%s7403_s11 + $0xd0] sm:$0xff]  }
 0x3d6   :  { %2691 = vmatprep.subr.bf16.mxu1 %v4825_v20  ;;  %2906 = vmatprep.subr.bf16.mxu0 %v4835_v21  ;;  %v5691_v20 = vld [vmem:[%s7403_s11 + $0x78] sm:$0xff]  }
 0x3d7   :  { %v5692_v21 = vld [vmem:[%s7403_s11 + $0x98] sm:$0xff]  }
 0x3d9   :  { %2692 = vmatpush1.bf16.msra.mxu1 %v4824_v22  ;;  %2907 = vmatpush1.bf16.msra.mxu0 %v4834_v23  ;;  %v5693_v22 = vld [vmem:[%s7403_s11 + $0x38] sm:$0xff]   ;;  %v5694_v23 = vld [vmem:[%s7403_s11 + $0xe0] sm:$0xff]  }
 0x3da   :  { %2693 = vmatprep.subr.bf16.mxu1 %v4841_v26  ;;  %2908 = vmatprep.subr.bf16.mxu0 %v4851_v27  ;;  %v5698_v26 = vld [vmem:[%s7403_s11 + $0xe8] sm:$0xff]  }
 0x3db   :  { %v5699_v27 = vld [vmem:[%s7403_s11 + $0xa8] sm:$0xff]  }
 0x3dd   :  { %2694 = vmatpush1.bf16.msra.mxu1 %v4840_v29  ;;  %2909 = vmatpush1.bf16.msra.mxu0 %v4850_v30  ;;  %v5703_v29 = vld [vmem:[%s7403_s11 + $0xb0] sm:$0xff]   ;;  %v5706_v30 = vld [vmem:[%s7403_s11 + $0xf8] sm:$0xff]  }
 0x3de   :  { %2773 = vmatprep.subr.bf16.mxu1 %v4797_v33  ;;  %5275 = vmatprep.subr.bf16.mxu0 %v5678_v28  ;;  %v5702_v28 = vld [vmem:[%s7403_s11 + $0xf0] sm:$0xff]   ;;  %v5710_v33 = vld [vmem:[%s7403_s11 + $0x1c0] sm:$0xff]  }
 0x3e0   :  { %4854 = vmatmul.mubr.msk.bf16.vlgmr.msra.gmra.mrb[32].mxu1 %vm2039_vm1, %v6718_v41  ;;  %4859 = vmatmul.mubr.msk.bf16.vlgmr.msra.gmra.mrb[32].mxu0 %vm2039_vm1, %v6718_v41 }
 0x3e1   :  { %2774 = vmatpush1.bf16.msra.mxu1 %v4796_v34  ;;  %2805 = vmatprep.mubr.bf16.mxu1 %v5820_v14  ;;  %v6952_v34 = vshrl.u32 %v2198_v31, 7 }
 0x3e2   :  { %2775 = vmatprep.subr.bf16.mxu1 %v4813_v37  ;;  %5276 = vmatpush3.bf16.msra.mxu0 %v5680_v38  ;;  %v6958_v38 = vld [vmem:[%s7406_s10 + $0x8] sm:$0xff] }
 0x3e3   :  { %5277 = vmatprep.subr.bf16.mxu0 %v5682_v42  ;;  %v2224_v37 = vsub.s32 6, %v6952_v34  ;;  %v2200_v40 = vsub.s32 0, %v6952_v34  ;;  %v6967_v42 = vld [vmem:[%s7406_s10] sm:$0xff] }
 0x3e5   :  { %2776 = vmatpush1.bf16.msra.mxu1 %v4812_v43  ;;  %v6961_v39 = vrot.slane %v6958_v38, %v2224_v37  ;;  %v2204_v43 = vsub.s32 1, %v6952_v34  ;;  %v2225_v46 = vrot.slane %v6967_v42, %v2224_v37 }
 0x3e6   :  { %2777 = vmatprep.subr.bf16.mxu1 %v4829_v44  ;;  %5278 = vmatpush3.bf16.msra.mxu0 %v5684_v45  ;;  %v2228_v44 = vsub.s32 7, %v6952_v34  ;;  %v2201_v45 = vrot.slane %v6967_v42, %v2200_v40 }
 0x3e7   :  { %5279 = vmatprep.subr.bf16.mxu0 %v5686_v15  ;;  %v2205_v47 = vrot.slane %v6967_v42, %v2204_v43  ;;  %v2208_v15 = vsub.s32 2, %v6952_v34 }
 0x3e9   :  { %2778 = vmatpush1.bf16.msra.mxu1 %v4828_v48  ;;  %v2229_v48 = vrot.slane %v6967_v42, %v2228_v44 }
 0x3ea   :  { %2779 = vmatprep.subr.bf16.mxu1 %v4845_v49  ;;  %5280 = vmatpush3.bf16.msra.mxu0 %v5688_v17  ;;  %v5701_v17 = vld [vmem:[%s7403_s11 + $0x108] sm:$0xff]  }
 0x3eb   :  { %5281 = vmatprep.subr.bf16.mxu0 %v5690_v19  ;;  %v2241_v19 = vrot.slane %v6958_v38, %v2208_v15 }
 0x3ed   :  { %2780 = vmatpush1.bf16.msra.mxu1 %v4844_v52 }
 0x3ee   :  { %2859 = vmatprep.subr.bf16.mxu1 %v4801_v53  ;;  %5282 = vmatpush3.bf16.msra.mxu0 %v5692_v21 }
 0x3ef   :  { %5283 = vmatprep.subr.bf16.mxu0 %v5694_v23 }
 0x3f0   :  { %4856 = vmatmul.mubr.msk.bf16.vlgmr.msra.gmra.mrb[36].mxu1 %vm2039_vm1, %v6718_v41 }
 0x3f1   :  { %2860 = vmatpush1.bf16.msra.mxu1 %v4800_v56  ;;  %2891 = vmatprep.mubr.bf16.mxu1 %v5820_v14  ;;  %v5670_v14 = vld [vmem:[%s7403_s11 + $0x40] sm:$0xff]  }
 0x3f2   :  { %2861 = vmatprep.subr.bf16.mxu1 %v4817_v57  ;;  %5284 = vmatpush3.bf16.msra.mxu0 %v5695_v24 }
 0x3f3   :  { %5285 = vmatprep.subr.bf16.mxu0 %v5698_v26 }
 0x3f5   :  { %2862 = vmatpush1.bf16.msra.mxu1 %v4816_v60 }
 0x3f6   :  { %2863 = vmatprep.subr.bf16.mxu1 %v4833_v61  ;;  %5286 = vmatpush3.bf16.msra.mxu0 %v5699_v27 }
 0x3f7   :  { %5287 = vmatprep.subr.bf16.mxu0 %v5702_v28 }
 0x3f9   :  { %2864 = vmatpush1.bf16.msra.mxu1 %v4832_v1 }
 0x3fa   :  { %2865 = vmatprep.subr.bf16.mxu1 %v4849_v2  ;;  %5288 = vmatpush3.bf16.msra.mxu0 %v5703_v29 }
 0x3fb   :  { %5289 = vmatprep.subr.bf16.mxu0 %v5706_v30  ;;  %v5708_v30 = vld [vmem:[%s7403_s11 + $0x158] sm:$0xff]  }
 0x3fd   :  { %2866 = vmatpush1.bf16.msra.mxu1 %v4848_v3 }
 0x3fe   :  { %5253 = vmatprep.subr.bf16.mxu1 %v5670_v14  ;;  %5290 = vmatpush3.bf16.msra.mxu0 %v5707_v32 }
 0x3ff   :  { %5319 = vmatprep.subr.bf16.mxu0 %v5710_v33 }
 0x400   :  { %4858 = vmatmul.mubr.msk.bf16.vlgmr.msra.gmra.mrb[40].mxu1 %vm2039_vm1, %v6718_v41  ;;  %v5676_v41 = vld [vmem:[%s7403_s11 + $0x58] sm:$0xff]  }
 0x401   :  { %5254 = vmatpush3.bf16.msra.mxu1 %v5671_v4 }
 0x402   :  { %5255 = vmatprep.subr.bf16.mxu1 %v5672_v5 }
 0x405   :  { %5256 = vmatpush3.bf16.msra.mxu1 %v5673_v6 }
 0x406   :  { %5257 = vmatprep.subr.bf16.mxu1 %v5674_v7 }
 0x409   :  { %5258 = vmatpush3.bf16.msra.mxu1 %v5675_v8 }
 0x40a   :  { %5259 = vmatprep.subr.bf16.mxu1 %v5676_v41 }
 0x40d   :  { %5260 = vmatpush3.bf16.msra.mxu1 %v5677_v9 }
 0x40e   :  { %5261 = vmatprep.subr.bf16.mxu1 %v5679_v10 }
 0x411   :  { %5262 = vmatpush3.bf16.msra.mxu1 %v5681_v11 }
 0x412   :  { %5263 = vmatprep.subr.bf16.mxu1 %v5683_v12  ;;  %v5697_v12 = vld [vmem:[%s7403_s11 + $0x100] sm:$0xff]  }
 0x415   :  { %5264 = vmatpush3.bf16.msra.mxu1 %v5685_v13  ;;  %v5700_v13 = vld [vmem:[%s7403_s11 + $0x148] sm:$0xff]  }
 0x416   :  { %5265 = vmatprep.subr.bf16.mxu1 %v5687_v16  ;;  %v2212_v16 = vsub.s32 3, %v6952_v34 }
 0x418   :  { %v2213_v21 = vrot.slane %v6967_v42, %v2212_v16 }
 0x419   :  { %5266 = vmatpush3.bf16.msra.mxu1 %v5689_v18  ;;  %v2209_v18 = vrot.slane %v6967_v42, %v2208_v15 }
 0x41a   :  { %5267 = vmatprep.subr.bf16.mxu1 %v5691_v20  ;;  %v5704_v20 = vld [vmem:[%s7403_s11 + $0x150] sm:$0xff]  }
 0x41d   :  { %5268 = vmatpush3.bf16.msra.mxu1 %v5693_v22  ;;  %v2245_v22 = vrot.slane %v6958_v38, %v2212_v16 }
 0x41e   :  { %5297 = vmatprep.subr.bf16.mxu1 %v5696_v25  ;;  %v5705_v25 = vld [vmem:[%s7403_s11 + $0x110] sm:$0xff]  }
 0x493   :  { %v2635_v49 = vpop.f32.mrb[24].mxu1  ;;  %v2764_v50 = vpop.f32.mrb[24].mxu0 }
 0x494   :  { %v2636_v51 = vadd.f32 %v2635_v49, %v2201_v45  ;;  %v2765_v52 = vadd.f32 %v2764_v50, %v2225_v46  ;;  %v2637_v53 = vpop.f32.mrb[25].mxu1  ;;  %v2766_v54 = vpop.f32.mrb[25].mxu0 }
 0x495   :  { %v2638_v55 = vadd.f32 %v2637_v53, %v2205_v47  ;;  %v2767_v56 = vadd.f32 %v2766_v54, %v2229_v48  ;;  %v2639_v57 = vpop.f32.mrb[26].mxu1  ;;  %v2768_v58 = vpop.f32.mrb[26].mxu0 }
 0x496   :  { %v2640_v59 = vadd.f32 %v2639_v57, %v2201_v45  ;;  %v2769_v60 = vadd.f32 %v2768_v58, %v2225_v46  ;;  %v2641_v61 = vpop.f32.mrb[27].mxu1  ;;  %v2770_v62 = vpop.f32.mrb[27].mxu0  ;;  %v2945_v2 = vmax.f32 %v2636_v51, 0.0  ;;  %v2951_v3 = vmax.f32 %v2765_v52, 0.0  ;;  %v5709_v51 = vld [vmem:[%s7403_s11 + $0x118] sm:$0xff]  }
 0x497   :  { %v2642_v63 = vadd.f32 %v2641_v61, %v2205_v47  ;;  %v2771_v1 = vadd.f32 %v2770_v62, %v2229_v48  ;;  %v2946_v5 = vmax.f32 %v2638_v55, 0.0  ;;  %v2952_v6 = vmax.f32 %v2767_v56, 0.0  ;;  %v5711_v56 = vld [vmem:[%s7403_s11 + $0x160] sm:$0xff]  }
 0x498   :  { %v2961_v14 = vmax.f32 %v2640_v59, 0.0  ;;  %v2967_v4 = vmax.f32 %v2769_v60, 0.0 }
 0x499   :  { %v2962_v7 = vmax.f32 %v2642_v63, 0.0  ;;  %v2968_v8 = vmax.f32 %v2771_v1, 0.0 }
 0x49a   :  { %v2977_v41 = vpack.c.bf16 %v2961_v14, %v2945_v2  ;;  %v6981_v9 = vpack.c.bf16 %v2967_v4, %v2951_v3  ;;  %v5712_v2 = vld [vmem:[%s7403_s11 + $0x180] sm:$0xff]   ;;  %v5714_v14 = vld [vmem:[%s7403_s11 + $0x1c8] sm:$0xff]   ;;  %v2216_v4 = vsub.s32 4, %v6952_v34 }
 0x49b   :  { %v2978_v10 = vpack.c.bf16 %v2962_v7, %v2946_v5  ;;  %v6983_v11 = vpack.c.bf16 %v2968_v8, %v2952_v6  ;;  %v5713_v3 = vld [vmem:[%s7403_s11 + $0x120] sm:$0xff]   ;;  %v5715_v5 = vld [vmem:[%s7403_s11 + $0x168] sm:$0xff]   ;;  %v2220_v6 = vsub.s32 5, %v6952_v34  ;;  %v5753_v34 = vld [vmem:[%s7403_s11 + $0x230] sm:$0xff]  }
 0x49c   :  { %v5716_v7 = vld [vmem:[%s7403_s11 + $0x188] sm:$0xff]  }
 0x49d   :  { %4056 = vmatprep.mubr.bf16.mxu1 %v2978_v10  ;;  %v5717_v8 = vld [vmem:[%s7403_s11 + $0x128] sm:$0xff]   ;;  %v5718_v10 = vld [vmem:[%s7403_s11 + $0x1d0] sm:$0xff]  }
 0x49e   :  { %4057 = vmatmul.mubr.bf16.vlgmr.msra.gmra.mrb[44].mxu1 %v2977_v41  ;;  %v2217_v41 = vrot.slane %v6967_v42, %v2216_v4 }
 0x49f   :  { %5298 = vmatpush3.bf16.msra.mxu1 %v5697_v12  ;;  %v5719_v12 = vld [vmem:[%s7403_s11 + $0x170] sm:$0xff]  }
 0x4a0   :  { %5299 = vmatprep.subr.bf16.mxu1 %v5700_v13  ;;  %v2221_v13 = vrot.slane %v6967_v42, %v2220_v6 }
 0x4a3   :  { %v2678_v23 = vpop.f32.mrb[28].mxu1  ;;  %v2850_v24 = vpop.f32.mrb[28].mxu0  ;;  %5300 = vmatpush3.bf16.msra.mxu1 %v5701_v17  ;;  %v5720_v17 = vld [vmem:[%s7403_s11 + $0x190] sm:$0xff]  }
 0x4a4   :  { %v2679_v26 = vadd.f32 %v2678_v23, %v2209_v18  ;;  %v2851_v27 = vadd.f32 %v2850_v24, %v2241_v19  ;;  %v2680_v28 = vpop.f32.mrb[29].mxu1  ;;  %v2852_v29 = vpop.f32.mrb[29].mxu0  ;;  %5301 = vmatprep.subr.bf16.mxu1 %v5704_v20 }
 0x4a5   :  { %v2681_v32 = vadd.f32 %v2680_v28, %v2213_v21  ;;  %v2853_v31 = vadd.f32 %v2852_v29, %v2245_v22  ;;  %v2682_v33 = vpop.f32.mrb[30].mxu1  ;;  %v2854_v37 = vpop.f32.mrb[30].mxu0 }
 0x4a6   :  { %v2683_v45 = vadd.f32 %v2682_v33, %v2209_v18  ;;  %v2855_v46 = vadd.f32 %v2854_v37, %v2241_v19  ;;  %v2684_v47 = vpop.f32.mrb[31].mxu1  ;;  %v2856_v48 = vpop.f32.mrb[31].mxu0  ;;  %v2947_v52 = vmax.f32 %v2679_v26, 0.0  ;;  %v2955_v53 = vmax.f32 %v2851_v27, 0.0  ;;  %v5721_v18 = vld [vmem:[%s7403_s11 + $0x130] sm:$0xff]   ;;  %v5724_v33 = vld [vmem:[%s7403_s11 + $0x198] sm:$0xff]  }
 0x4a7   :  { %v2685_v49 = vadd.f32 %v2684_v47, %v2213_v21  ;;  %v2857_v50 = vadd.f32 %v2856_v48, %v2245_v22  ;;  %5302 = vmatpush3.bf16.msra.mxu1 %v5705_v25  ;;  %v2948_v57 = vmax.f32 %v2681_v32, 0.0  ;;  %v2956_v58 = vmax.f32 %v2853_v31, 0.0  ;;  %v5723_v22 = vld [vmem:[%s7403_s11 + $0x178] sm:$0xff]  }
 0x4a8   :  { %v2963_v54 = vmax.f32 %v2683_v45, 0.0  ;;  %v2971_v55 = vmax.f32 %v2855_v46, 0.0  ;;  %5303 = vmatprep.subr.bf16.mxu1 %v5708_v30  ;;  %v5725_v37 = vld [vmem:[%s7403_s11 + $0x138] sm:$0xff]  }
 0x4a9   :  { %v2964_v59 = vmax.f32 %v2685_v49, 0.0  ;;  %v2972_v60 = vmax.f32 %v2857_v50, 0.0  ;;  %v5728_v49 = vld [vmem:[%s7403_s11 + $0x240] sm:$0xff]  }
 0x4aa   :  { %v2979_v61 = vpack.c.bf16 %v2963_v54, %v2947_v52  ;;  %v7015_v62 = vpack.c.bf16 %v2971_v55, %v2955_v53 }
 0x4ab   :  { %v2980_v63 = vpack.c.bf16 %v2964_v59, %v2948_v57  ;;  %v7017_v1 = vpack.c.bf16 %v2972_v60, %v2956_v58  ;;  %5304 = vmatpush3.bf16.msra.mxu1 %v5709_v51  ;;  %v5727_v58 = vld [vmem:[%s7403_s11 + $0x1a0] sm:$0xff]   ;;  %v5730_v60 = vld [vmem:[%s7403_s11 + $0x1e8] sm:$0xff]  }
 0x4ac   :  { %5305 = vmatprep.subr.bf16.mxu1 %v5711_v56  ;;  %v5729_v59 = vld [vmem:[%s7403_s11 + $0x200] sm:$0xff]  }
 0x4ad   :  { %4097 = vmatprep.mubr.bf16.mxu0 %v2980_v63  ;;  %v5731_v63 = vld [vmem:[%s7403_s11 + $0x1a8] sm:$0xff]  }
 0x4ae   :  { %4098 = vmatmul.mubr.bf16.vlgmr.msra.gmra.mrb[36].mxu0 %v2979_v61  ;;  %v5732_v61 = vld [vmem:[%s7403_s11 + $0x248] sm:$0xff]  }
 0x4af   :  { %5320 = vmatpush3.bf16.msra.mxu0 %v5712_v2  ;;  %5306 = vmatpush3.bf16.msra.mxu1 %v5713_v3  ;;  %v5733_v2 = vld [vmem:[%s7403_s11 + $0x208] sm:$0xff]   ;;  %v2233_v3 = vrot.slane %v6958_v38, %v2200_v40  ;;  %v5737_v40 = vld [vmem:[%s7403_s11 + $0x210] sm:$0xff]  }
 0x4b0   :  { %4179 = vmatprep.mubr.bf16.mxu0 %v6983_v11  ;;  %5321 = vmatprep.subr.bf16.mxu0 %v5714_v14  ;;  %v2261_v11 = vrot.slane %v6958_v38, %v2228_v44  ;;  %v5722_v44 = vld [vmem:[%s7403_s11 + $0x1d8] sm:$0xff]   ;;  %v5734_v14 = vld [vmem:[%s7403_s11 + $0x1f0] sm:$0xff]  }
 0x4b1   :  { %5307 = vmatprep.subr.bf16.mxu1 %v5715_v5  ;;  %v5736_v5 = vld [vmem:[%s7403_s11 + $0x250] sm:$0xff]  }
 0x4b3   :  { %5322 = vmatpush3.bf16.msra.mxu0 %v5716_v7  ;;  %v2721_v15 = vpop.f32.mrb[32].mxu1  ;;  %v2936_v16 = vpop.f32.mrb[32].mxu0  ;;  %5308 = vmatpush3.bf16.msra.mxu1 %v5717_v8  ;;  %v2237_v7 = vrot.slane %v6958_v38, %v2204_v43  ;;  %v5740_v43 = vld [vmem:[%s7403_s11 + $0x258] sm:$0xff]  }
 0x4b4   :  { %v2722_v19 = vadd.f32 %v2721_v15, %v2217_v41  ;;  %v2937_v20 = vadd.f32 %v2936_v16, %v6961_v39  ;;  %v2723_v42 = vpop.f32.mrb[33].mxu1  ;;  %v2938_v21 = vpop.f32.mrb[33].mxu0  ;;  %5323 = vmatprep.subr.bf16.mxu0 %v5718_v10  ;;  %5309 = vmatprep.subr.bf16.mxu1 %v5719_v12 }
 0x4b5   :  { %v2724_v23 = vadd.f32 %v2723_v42, %v2221_v13  ;;  %v2939_v24 = vadd.f32 %v2938_v21, %v2261_v11  ;;  %v2725_v25 = vpop.f32.mrb[34].mxu1  ;;  %v2940_v26 = vpop.f32.mrb[34].mxu0 }
 0x4b6   :  { %v2726_v27 = vadd.f32 %v2725_v25, %v2217_v41  ;;  %v2941_v28 = vadd.f32 %v2940_v26, %v6961_v39  ;;  %v2727_v29 = vpop.f32.mrb[35].mxu1  ;;  %v2942_v30 = vpop.f32.mrb[35].mxu0  ;;  %v2949_v45 = vmax.f32 %v2722_v19, 0.0  ;;  %v2959_v46 = vmax.f32 %v2937_v20, 0.0  ;;  %v5726_v39 = vld [vmem:[%s7403_s11 + $0x1e0] sm:$0xff]   ;;  %v5735_v41 = vld [vmem:[%s7403_s11 + $0x1b0] sm:$0xff]  }
 0x4b7   :  { %v2728_v32 = vadd.f32 %v2727_v29, %v2221_v13  ;;  %v2943_v31 = vadd.f32 %v2942_v30, %v2261_v11  ;;  %5324 = vmatpush3.bf16.msra.mxu0 %v5720_v17  ;;  %5310 = vmatpush3.bf16.msra.mxu1 %v5721_v18  ;;  %v2950_v50 = vmax.f32 %v2724_v23, 0.0  ;;  %v2960_v51 = vmax.f32 %v2939_v24, 0.0  ;;  %v5738_v13 = vld [vmem:[%s7403_s11 + $0x1f8] sm:$0xff]   ;;  %v5746_v29 = vld [vmem:[%s7403_s11 + $0x2c8] sm:$0xff]  }
 0x4b8   :  { %v2965_v47 = vmax.f32 %v2726_v27, 0.0  ;;  %v2975_v48 = vmax.f32 %v2941_v28, 0.0  ;;  %5325 = vmatprep.subr.bf16.mxu0 %v5722_v44  ;;  %5311 = vmatprep.subr.bf16.mxu1 %v5723_v22  ;;  %v5739_v19 = vld [vmem:[%s7403_s11 + $0x1b8] sm:$0xff]   ;;  %v5742_v44 = vld [vmem:[%s7403_s11 + $0x2c0] sm:$0xff]   ;;  %v5747_v30 = vld [vmem:[%s7403_s11 + $0x268] sm:$0xff]  }
 0x4b9   :  { %v2966_v52 = vmax.f32 %v2728_v32, 0.0  ;;  %v2976_v53 = vmax.f32 %v2943_v31, 0.0  ;;  %v5741_v20 = vld [vmem:[%s7403_s11 + $0x218] sm:$0xff]   ;;  %v5743_v22 = vld [vmem:[%s7403_s11 + $0x260] sm:$0xff]   ;;  %v5748_v32 = vld [vmem:[%s7403_s11 + $0x288] sm:$0xff]   ;;  %v2249_v31 = vrot.slane %v6958_v38, %v2216_v4 }
 0x4ba   :  { %v2981_v54 = vpack.c.bf16 %v2965_v47, %v2949_v45  ;;  %v7081_v55 = vpack.c.bf16 %v2975_v48, %v2959_v46  ;;  %v5744_v27 = vld [vmem:[%s7403_s11 + $0x280] sm:$0xff]   ;;  %v5752_v4 = vld [vmem:[%s7403_s11 + $0x290] sm:$0xff]  }
 0x4bb   :  { %v2982_v56 = vpack.c.bf16 %v2966_v52, %v2950_v50  ;;  %v7083_v57 = vpack.c.bf16 %v2976_v53, %v2960_v51  ;;  %5326 = vmatpush3.bf16.msra.mxu0 %v5724_v33  ;;  %5312 = vmatpush3.bf16.msra.mxu1 %v5725_v37  ;;  %v5745_v28 = vld [vmem:[%s7403_s11 + $0x220] sm:$0xff]   ;;  %v5749_v33 = vld [vmem:[%s7403_s11 + $0x228] sm:$0xff]   ;;  %v5751_v37 = vld [vmem:[%s7403_s11 + $0x270] sm:$0xff]  }
 0x4bc   :  { %5327 = vmatprep.subr.bf16.mxu0 %v5726_v39  ;;  %5341 = vmatprep.subr.bf16.mxu1 %v5728_v49  ;;  %v5755_v39 = vld [vmem:[%s7403_s11 + $0x278] sm:$0xff]  }
 0x4bd   :  { %4138 = vmatprep.mubr.bf16.mxu1 %v2982_v56  ;;  %v5756_v52 = vld [vmem:[%s7403_s11 + $0x298] sm:$0xff]  }
 0x4be   :  { %4139 = vmatmul.mubr.bf16.vlgmr.msra.gmra.mrb[48].mxu1 %v2981_v54  ;;  %v5757_v56 = vld [vmem:[%s7403_s11 + $0x238] sm:$0xff]  }
 0x4bf   :  { %5328 = vmatpush3.bf16.msra.mxu0 %v5727_v58  ;;  %5342 = vmatpush3.bf16.msra.mxu1 %v5729_v59  ;;  %v5758_v58 = vld [vmem:[%s7403_s11 + $0x2e0] sm:$0xff]  }
 0x4c0   :  { %5329 = vmatprep.subr.bf16.mxu0 %v5730_v60  ;;  %5343 = vmatprep.subr.bf16.mxu1 %v5732_v61  ;;  %v5760_v61 = vld [vmem:[%s7403_s11 + $0x340] sm:$0xff]  }
 0x4c3   :  { %5330 = vmatpush3.bf16.msra.mxu0 %v5731_v63  ;;  %v2807_v8 = vpop.f32.mrb[36].mxu1  ;;  %5344 = vmatpush3.bf16.msra.mxu1 %v5733_v2 }
 0x4c4   :  { %v2808_v10 = vadd.f32 %v2807_v8, %v2233_v3  ;;  %v2809_v12 = vpop.f32.mrb[37].mxu1  ;;  %5331 = vmatprep.subr.bf16.mxu0 %v5734_v14  ;;  %5345 = vmatprep.subr.bf16.mxu1 %v5736_v5  ;;  %v5761_v14 = vld [vmem:[%s7403_s11 + $0x300] sm:$0xff]   ;;  %v5762_v5 = vld [vmem:[%s7403_s11 + $0x2e8] sm:$0xff]  }
 0x4c5   :  { %v2810_v11 = vadd.f32 %v2809_v12, %v2237_v7  ;;  %v2811_v15 = vpop.f32.mrb[38].mxu1  ;;  %v5763_v8 = vld [vmem:[%s7403_s11 + $0x2a8] sm:$0xff]   ;;  %v5767_v12 = vld [vmem:[%s7403_s11 + $0x2b0] sm:$0xff]  }
 0x4c6   :  { %v2812_v16 = vadd.f32 %v2811_v15, %v2233_v3  ;;  %v2813_v17 = vpop.f32.mrb[39].mxu1  ;;  %v2953_v42 = vmax.f32 %v2808_v10, 0.0  ;;  %v5759_v3 = vld [vmem:[%s7403_s11 + $0x2a0] sm:$0xff]   ;;  %v5768_v10 = vld [vmem:[%s7403_s11 + $0x350] sm:$0xff]   ;;  %v5771_v15 = vld [vmem:[%s7403_s11 + $0x2b8] sm:$0xff]  }
 0x4c7   :  { %v2814_v18 = vadd.f32 %v2813_v17, %v2237_v7  ;;  %5332 = vmatpush3.bf16.msra.mxu0 %v5735_v41  ;;  %5346 = vmatpush3.bf16.msra.mxu1 %v5737_v40  ;;  %v2954_v23 = vmax.f32 %v2810_v11, 0.0  ;;  %v5764_v7 = vld [vmem:[%s7403_s11 + $0x348] sm:$0xff]   ;;  %v5766_v40 = vld [vmem:[%s7403_s11 + $0x2f0] sm:$0xff]   ;;  %v5772_v11 = vld [vmem:[%s7403_s11 + $0x358] sm:$0xff]  }
 0x4c8   :  { %v2969_v21 = vmax.f32 %v2812_v16, 0.0  ;;  %5333 = vmatprep.subr.bf16.mxu0 %v5738_v13  ;;  %5347 = vmatprep.subr.bf16.mxu1 %v5740_v43  ;;  %v5765_v41 = vld [vmem:[%s7403_s11 + $0x308] sm:$0xff]   ;;  %v5769_v13 = vld [vmem:[%s7403_s11 + $0x310] sm:$0xff]   ;;  %v5770_v43 = vld [vmem:[%s7403_s11 + $0x2f8] sm:$0xff]  }
 0x4c9   :  { %v2970_v24 = vmax.f32 %v2814_v18, 0.0  ;;  %v5773_v16 = vld [vmem:[%s7403_s11 + $0x318] sm:$0xff]   ;;  %v5774_v17 = vld [vmem:[%s7403_s11 + $0x3c0] sm:$0xff]  }
 0x4ca   :  { %v2985_v25 = vpack.c.bf16 %v2969_v21, %v2953_v42  ;;  %v5775_v18 = vld [vmem:[%s7403_s11 + $0x360] sm:$0xff]   ;;  %v5778_v42 = vld [vmem:[%s7403_s11 + $0x3c8] sm:$0xff]  }
 0x4cb   :  { %v2986_v26 = vpack.c.bf16 %v2970_v24, %v2954_v23  ;;  %5334 = vmatpush3.bf16.msra.mxu0 %v5739_v19  ;;  %5348 = vmatpush3.bf16.msra.mxu1 %v5741_v20  ;;  %v5776_v19 = vld [vmem:[%s7403_s11 + $0x380] sm:$0xff]   ;;  %v5779_v21 = vld [vmem:[%s7403_s11 + $0x368] sm:$0xff]   ;;  %v5782_v23 = vld [vmem:[%s7403_s11 + $0x3d0] sm:$0xff]  }
 0x4cc   :  { %5363 = vmatprep.subr.bf16.mxu0 %v5742_v44  ;;  %5349 = vmatprep.subr.bf16.mxu1 %v5743_v22  ;;  %v5777_v20 = vld [vmem:[%s7403_s11 + $0x320] sm:$0xff]   ;;  %v5780_v44 = vld [vmem:[%s7403_s11 + $0x388] sm:$0xff]   ;;  %v5785_v24 = vld [vmem:[%s7403_s11 + $0x330] sm:$0xff]  }
 0x4cd   :  { %4220 = vmatprep.mubr.bf16.mxu1 %v2986_v26  ;;  %v5781_v22 = vld [vmem:[%s7403_s11 + $0x328] sm:$0xff]   ;;  %v5787_v26 = vld [vmem:[%s7403_s11 + $0x378] sm:$0xff]  }
 0x4ce   :  { %4180 = vmatmul.mubr.bf16.vlgmr.msra.gmra.mrb[40].mxu0 %v6981_v9  ;;  %v5750_v9 = vld [vmem:[%s7403_s11 + $0x2d0] sm:$0xff]  }
 0x4cf   :  { %5364 = vmatpush3.bf16.msra.mxu0 %v5744_v27  ;;  %4261 = vmatprep.mubr.bf16.mxu0 %v7017_v1  ;;  %v2253_v1 = vrot.slane %v6958_v38, %v2220_v6  ;;  %v5754_v38 = vld [vmem:[%s7403_s11 + $0x2d8] sm:$0xff]  }
 0x4d0   :  { %5350 = vmatpush3.bf16.msra.mxu1 %v5745_v28  ;;  %5365 = vmatprep.subr.bf16.mxu0 %v5746_v29  ;;  %v5788_v27 = vld [vmem:[%s7403_s11 + $0x398] sm:$0xff]   ;;  %v5790_v29 = vld [vmem:[%s7403_s11 + $0x3e0] sm:$0xff]  }
 0x4d1   :  { %5351 = vmatprep.subr.bf16.mxu1 %v5747_v30  ;;  %v5789_v28 = vld [vmem:[%s7403_s11 + $0x338] sm:$0xff]   ;;  %v5791_v30 = vld [vmem:[%s7403_s11 + $0x3a0] sm:$0xff]  }
 0x4d3   :  { %5366 = vmatpush3.bf16.msra.mxu0 %v5748_v32  ;;  %v2893_v45 = vpop.f32.mrb[40].mxu1  ;;  %v5792_v32 = vld [vmem:[%s7403_s11 + $0x3e8] sm:$0xff]  }
 0x4d4   :  { %v2894_v46 = vadd.f32 %v2893_v45, %v2249_v31  ;;  %5352 = vmatpush3.bf16.msra.mxu1 %v5749_v33  ;;  %v2895_v47 = vpop.f32.mrb[41].mxu1  ;;  %5367 = vmatprep.subr.bf16.mxu0 %v5750_v9  ;;  %v5794_v33 = vld [vmem:[%s7403_s11 + $0x3f0] sm:$0xff]  }
 0x4d5   :  { %v2896_v6 = vadd.f32 %v2895_v47, %v2253_v1  ;;  %v2897_v48 = vpop.f32.mrb[42].mxu1  ;;  %5353 = vmatprep.subr.bf16.mxu1 %v5751_v37  ;;  %v5795_v9 = vld [vmem:[%s7403_s11 + $0x3b0] sm:$0xff]   ;;  %v5797_v37 = vld [vmem:[%s7403_s11 + $0x3b8] sm:$0xff]  }
 0x4d6   :  { %v2898_v49 = vadd.f32 %v2897_v48, %v2249_v31  ;;  %v2899_v50 = vpop.f32.mrb[43].mxu1  ;;  %v2957_v53 = vmax.f32 %v2894_v46, 0.0  ;;  %v5793_v31 = vld [vmem:[%s7403_s11 + $0x3a8] sm:$0xff]  }
 0x4d7   :  { %v2900_v51 = vadd.f32 %v2899_v50, %v2253_v1  ;;  %5368 = vmatpush3.bf16.msra.mxu0 %v5752_v4  ;;  %v2958_v59 = vmax.f32 %v2896_v6, 0.0  ;;  %v5796_v1 = vld [vmem:[%s7403_s11 + $0x3f8] sm:$0xff]   ;;  %v4860_v6 = vld [vmem:[%s7407_s12] ss:$0 sm:$0xff] }
 0x4d8   :  { %v2973_v54 = vmax.f32 %v2898_v49, 0.0  ;;  %5354 = vmatpush3.bf16.msra.mxu1 %v5753_v34  ;;  %5369 = vmatprep.subr.bf16.mxu0 %v5754_v38 }
 0x4d9   :  { %v2974_v60 = vmax.f32 %v2900_v51, 0.0  ;;  %5355 = vmatprep.subr.bf16.mxu1 %v5755_v39 }
 0x4da   :  { %v7195_v63 = vpack.c.bf16 %v2973_v54, %v2957_v53 }
 0x4db   :  { %v2990_v2 = vpack.c.bf16 %v2974_v60, %v2958_v59  ;;  %5370 = vmatpush3.bf16.msra.mxu0 %v5756_v52 }
 0x4dc   :  { %5356 = vmatpush3.bf16.msra.mxu1 %v5757_v56  ;;  %5371 = vmatprep.subr.bf16.mxu0 %v5758_v58 }
 0x4dd   :  { %5385 = vmatprep.subr.bf16.mxu1 %v5760_v61 }
 0x4df   :  { %4221 = vmatmul.mubr.bf16.vlgmr.msra.gmra.mrb[52].mxu1 %v2985_v25  ;;  %5372 = vmatpush3.bf16.msra.mxu0 %v5759_v3  ;;  %v5786_v25 = vld [vmem:[%s7403_s11 + $0x3d8] sm:$0xff]  }
 0x4e0   :  { %5386 = vmatpush3.bf16.msra.mxu1 %v5761_v14  ;;  %4302 = vmatprep.mubr.bf16.mxu1 %v2990_v2 }
 0x4e1   :  { %5373 = vmatprep.subr.bf16.mxu0 %v5762_v5  ;;  %5387 = vmatprep.subr.bf16.mxu1 %v5764_v7 }
 0x4e3   :  { %5374 = vmatpush3.bf16.msra.mxu0 %v5763_v8 }
 0x4e4   :  { %5388 = vmatpush3.bf16.msra.mxu1 %v5765_v41  ;;  %5375 = vmatprep.subr.bf16.mxu0 %v5766_v40 }
 0x4e5   :  { %5389 = vmatprep.subr.bf16.mxu1 %v5768_v10 }
 0x4e7   :  { %5376 = vmatpush3.bf16.msra.mxu0 %v5767_v12 }
 0x4e8   :  { %5390 = vmatpush3.bf16.msra.mxu1 %v5769_v13  ;;  %5377 = vmatprep.subr.bf16.mxu0 %v5770_v43 }
 0x4e9   :  { %5391 = vmatprep.subr.bf16.mxu1 %v5772_v11 }
 0x4eb   :  { %5378 = vmatpush3.bf16.msra.mxu0 %v5771_v15 }
 0x4ec   :  { %5392 = vmatpush3.bf16.msra.mxu1 %v5773_v16  ;;  %5407 = vmatprep.subr.bf16.mxu0 %v5774_v17 }
 0x4ed   :  { %5393 = vmatprep.subr.bf16.mxu1 %v5775_v18 }
 0x4ee   :  { %4262 = vmatmul.mubr.bf16.vlgmr.msra.gmra.mrb[44].mxu0 %v7015_v62  ;;  %v5783_v62 = vld [vmem:[%s7403_s11 + $0x370] sm:$0xff]  }
 0x4ef   :  { %5408 = vmatpush3.bf16.msra.mxu0 %v5776_v19  ;;  %4343 = vmatprep.mubr.bf16.mxu0 %v7083_v57  ;;  %v5784_v57 = vld [vmem:[%s7403_s11 + $0x390] sm:$0xff]  }
 0x4f0   :  { %5394 = vmatpush3.bf16.msra.mxu1 %v5777_v20  ;;  %5409 = vmatprep.subr.bf16.mxu0 %v5778_v42 }
 0x4f1   :  { %5395 = vmatprep.subr.bf16.mxu1 %v5779_v21 }
 0x4f3   :  { %5410 = vmatpush3.bf16.msra.mxu0 %v5780_v44 }
 0x4f4   :  { %5396 = vmatpush3.bf16.msra.mxu1 %v5781_v22  ;;  %5411 = vmatprep.subr.bf16.mxu0 %v5782_v23 }
 0x4f5   :  { %5397 = vmatprep.subr.bf16.mxu1 %v5783_v62 }
 0x4f7   :  { %5412 = vmatpush3.bf16.msra.mxu0 %v5784_v57 }
 0x4f8   :  { %5398 = vmatpush3.bf16.msra.mxu1 %v5785_v24  ;;  %5413 = vmatprep.subr.bf16.mxu0 %v5786_v25 }
 0x4f9   :  { %5399 = vmatprep.subr.bf16.mxu1 %v5787_v26 }
 0x4fb   :  { %5414 = vmatpush3.bf16.msra.mxu0 %v5788_v27 }
 0x4fc   :  { %5400 = vmatpush3.bf16.msra.mxu1 %v5789_v28  ;;  %5415 = vmatprep.subr.bf16.mxu0 %v5790_v29 }
 0x4fd   :  { %5455 = vmatprep.subr.bf16.mxu1 %v5818_v0 }
 0x4ff   :  { %4303 = vmatmul.mubr.bf16.vlgmr.msra.gmra.mrb[56].mxu1 %v7195_v63  ;;  %5416 = vmatpush3.bf16.msra.mxu0 %v5791_v30 }
 0x500   :  { %5417 = vmatprep.subr.bf16.mxu0 %v5792_v32  ;;  %5463 = vmatprep.mubr.msk.bf16.mxu1 %vm5819_vm0, %v5818_v0 }
 0x503   :  { %5418 = vmatpush3.bf16.msra.mxu0 %v5793_v31 }
 0x504   :  { %5419 = vmatprep.subr.bf16.mxu0 %v5794_v33 }
 0x507   :  { %5420 = vmatpush3.bf16.msra.mxu0 %v5795_v9 }
 0x508   :  { %5421 = vmatprep.subr.bf16.mxu0 %v5796_v1 }
 0x50b   :  { %5422 = vmatpush3.bf16.msra.mxu0 %v5797_v37 }
 0x50c   :  { %5467 = vmatprep.subr.bf16.mxu0 %v5818_v0 }
 0x50e   :  { %4344 = vmatmul.mubr.bf16.vlgmr.msra.gmra.mrb[48].mxu0 %v7081_v55 }
 0x50f   :  { %5483 = vmatprep.mubr.msk.bf16.mxu0 %vm5819_vm0, %v5818_v0 }
 0x571   :  { %v5269_v45 = vpop.f32.mrb[44].mxu1 }
 0x572   :  { %v5270_v4 = vpop.f32.mrb[45].mxu1 }
 0x573   :  { %v5271_v46 = vadd.f32 %v5270_v4, %v5269_v45  ;;  %v5272_v47 = vpop.f32.mrb[46].mxu1 }
 0x574   :  { %v5273_v34 = vpop.f32.mrb[47].mxu1 }
 0x575   :  { %v5274_v38 = vadd.f32 %v5273_v34, %v5272_v47  ;;  %v4059_v49 = vadd.f32 %v5271_v46, %v4860_v6 }
 0x577   :  { %v4062_v55 = vadd.f32 %v5274_v38, %v4860_v6 }
 0x581   :  { %v5291_v48 = vpop.f32.mrb[36].mxu0 }
 0x582   :  { %v5292_v39 = vpop.f32.mrb[37].mxu0 }
 0x583   :  { %v5293_v50 = vadd.f32 %v5292_v39, %v5291_v48  ;;  %v5294_v51 = vpop.f32.mrb[38].mxu0 }
 0x584   :  { %v5295_v52 = vpop.f32.mrb[39].mxu0 }
 0x585   :  { %v4100_v53 = vadd.f32 %v5293_v50, %v4059_v49  ;;  %v5296_v54 = vadd.f32 %v5295_v52, %v5294_v51 }
 0x587   :  { %v4103_v56 = vadd.f32 %v5296_v54, %v4062_v55 }
 0x591   :  { %v5313_v58 = vpop.f32.mrb[48].mxu1 }
 0x592   :  { %v5314_v59 = vpop.f32.mrb[49].mxu1 }
 0x593   :  { %v5315_v60 = vadd.f32 %v5314_v59, %v5313_v58  ;;  %v5316_v61 = vpop.f32.mrb[50].mxu1  ;;  %v5799_v58 = vld [vmem:[%s7408_s15 + $0x8] sm:$0xff]   ;;  %v5800_v59 = vld [vmem:[%s7408_s15 + $0x10] sm:$0xff]  }
 0x594   :  { %v5317_v63 = vpop.f32.mrb[51].mxu1 }
 0x595   :  { %v4141_v2 = vadd.f32 %v5315_v60, %v4100_v53  ;;  %v5318_v3 = vadd.f32 %v5317_v63, %v5316_v61  ;;  %v5801_v60 = vld [vmem:[%s7408_s15 + $0x18] sm:$0xff]   ;;  %v5802_v61 = vld [vmem:[%s7409_s17] sm:$0xff]   ;;  %v5803_v63 = vld [vmem:[%s7409_s17 + $0x8] sm:$0xff]  }
 0x596   :  { %5468 = vmatpush3.bf16.msra.mxu0 %v5802_v61 }
 0x597   :  { %v4144_v14 = vadd.f32 %v5318_v3, %v4103_v56  ;;  %5469 = vmatprep.subr.bf16.mxu0 %v5818_v0  ;;  %v5805_v3 = vld [vmem:[%s7409_s17 + $0x18] sm:$0xff]  }
 0x59a   :  { %5470 = vmatpush3.bf16.msra.mxu0 %v5803_v63 }
 0x59b   :  { %5471 = vmatprep.subr.bf16.mxu0 %v5818_v0 }
 0x5a1   :  { %v5335_v5 = vpop.f32.mrb[40].mxu0 }
 0x5a2   :  { %v5336_v7 = vpop.f32.mrb[41].mxu0 }
 0x5a3   :  { %v5337_v8 = vadd.f32 %v5336_v7, %v5335_v5  ;;  %v5338_v41 = vpop.f32.mrb[42].mxu0  ;;  %v5807_v5 = vld [vmem:[%s7409_s17 + $0x28] sm:$0xff]  }
 0x5a4   :  { %v5339_v40 = vpop.f32.mrb[43].mxu0 }
 0x5a5   :  { %v4182_v10 = vadd.f32 %v5337_v8, %v4141_v2  ;;  %v5340_v12 = vadd.f32 %v5339_v40, %v5338_v41  ;;  %v5804_v2 = vld [vmem:[%s7409_s17 + $0x10] sm:$0xff]  }
 0x5a6   :  { %5472 = vmatpush3.bf16.msra.mxu0 %v5804_v2 }
 0x5a7   :  { %v4185_v13 = vadd.f32 %v5340_v12, %v4144_v14  ;;  %5473 = vmatprep.subr.bf16.mxu0 %v5818_v0  ;;  %v5806_v14 = vld [vmem:[%s7409_s17 + $0x20] sm:$0xff]  }
 0x5aa   :  { %5474 = vmatpush3.bf16.msra.mxu0 %v5805_v3 }
 0x5ab   :  { %5475 = vmatprep.subr.bf16.mxu0 %v5818_v0 }
 0x5ae   :  { %5476 = vmatpush3.bf16.msra.mxu0 %v5806_v14 }
 0x5af   :  { %5477 = vmatprep.subr.bf16.mxu0 %v5818_v0 }
 0x5b2   :  { %v5357_v43 = vpop.f32.mrb[52].mxu1  ;;  %5478 = vmatpush3.bf16.msra.mxu0 %v5807_v5 }
 0x5b3   :  { %v5358_v11 = vpop.f32.mrb[53].mxu1  ;;  %5479 = vmatprep.subr.bf16.mxu0 %v5818_v0 }
 0x5b4   :  { %v5359_v15 = vadd.f32 %v5358_v11, %v5357_v43  ;;  %v5360_v16 = vpop.f32.mrb[54].mxu1  ;;  %v4989_v43 = vld [vmem:[%s7410_s13] ss:$0 sm:$0xff] }
 0x5b5   :  { %v5361_v17 = vpop.f32.mrb[55].mxu1 }
 0x5b6   :  { %v4223_v18 = vadd.f32 %v5359_v15, %v4182_v10  ;;  %v5362_v19 = vadd.f32 %v5361_v17, %v5360_v16 }
 0x5b8   :  { %v4226_v20 = vadd.f32 %v5362_v19, %v4185_v13 }
 0x5c1   :  { %v5379_v42 = vpop.f32.mrb[44].mxu0 }
 0x5c2   :  { %v5380_v21 = vpop.f32.mrb[45].mxu0 }
 0x5c3   :  { %v5381_v44 = vadd.f32 %v5380_v21, %v5379_v42  ;;  %v5382_v22 = vpop.f32.mrb[46].mxu0 }
 0x5c4   :  { %v5383_v23 = vpop.f32.mrb[47].mxu0 }
 0x5c5   :  { %v4264_v62 = vadd.f32 %v5381_v44, %v4223_v18  ;;  %v5384_v57 = vadd.f32 %v5383_v23, %v5382_v22  ;;  %v4990_v18 = vld [vmem:[%s7411_s14] ss:$0 sm:$0xff]  ;;  %v5808_v44 = vld [vmem:[%s7409_s17 + $0x30] sm:$0xff]   ;;  %v5809_v22 = vld [vmem:[%s7409_s17 + $0x38] sm:$0xff]  }
 0x5c6   :  { %5480 = vmatpush3.bf16.msra.mxu0 %v5808_v44  ;;  %v4991_v23 = vld [vmem:[%s7412_s16] ss:$0 sm:$0xff] }
 0x5c7   :  { %v4267_v24 = vadd.f32 %v5384_v57, %v4226_v20  ;;  %5481 = vmatprep.subr.bf16.mxu0 %v5818_v0 }
 0x5ca   :  { %5482 = vmatpush3.bf16.msra.mxu0 %v5809_v22 }
 0x5d2   :  { %v5401_v25 = vpop.f32.mrb[56].mxu1 }
 0x5d3   :  { %v5402_v26 = vpop.f32.mrb[57].mxu1 }
 0x5d4   :  { %v5403_v27 = vadd.f32 %v5402_v26, %v5401_v25  ;;  %v5404_v28 = vpop.f32.mrb[58].mxu1 }
 0x5d5   :  { %v5405_v29 = vpop.f32.mrb[59].mxu1 }
 0x5d6   :  { %v4305_v30 = vadd.f32 %v5403_v27, %v4264_v62  ;;  %v5406_v32 = vadd.f32 %v5405_v29, %v5404_v28 }
 0x5d8   :  { %v4308_v31 = vadd.f32 %v5406_v32, %v4267_v24 }
 0x5e1   :  { %v5423_v33 = vpop.f32.mrb[48].mxu0 }
 0x5e2   :  { %v5424_v9 = vpop.f32.mrb[49].mxu0 }
 0x5e3   :  { %v5425_v1 = vadd.f32 %v5424_v9, %v5423_v33  ;;  %v5426_v37 = vpop.f32.mrb[50].mxu0 }
 0x5e4   :  { %v5427_v45 = vpop.f32.mrb[51].mxu0 }
 0x5e5   :  { %v4346_v4 = vadd.f32 %v5425_v1, %v4305_v30  ;;  %v5428_v46 = vadd.f32 %v5427_v45, %v5426_v37 }
 0x5e7   :  { %v4349_v47 = vadd.f32 %v5428_v46, %v4308_v31  ;;  %v4352_v34 = vadd.f32 %v4346_v4, %v6700_v36 }
 0x5e9   :  { %v4356_v38 = vsel %vm2039_vm1, %v4352_v34, 0.0  ;;  %v4353_v6 = vadd.f32 %v4349_v47, %v6702_v35  ;;  %v5798_v35 = vld [vmem:[%s7408_s15] sm:$0xff]  }
 0x5ea   :  { %4357 = vadd.xlane.f32.xlu0 %v4356_v38  ;;  %5456 = vmatpush3.bf16.msra.mxu1 %v5798_v35 }
 0x5eb   :  { %v4359_v48 = vsel %vm2039_vm1, %v4353_v6, 0.0  ;;  %5457 = vmatprep.subr.bf16.mxu1 %v5818_v0 }
 0x5ec   :  { %4360 = vadd.xlane.f32.xlu1 %v4359_v48 }
 0x5ee   :  { %5458 = vmatpush3.bf16.msra.mxu1 %v5799_v58 }
 0x5ef   :  { %5459 = vmatprep.subr.bf16.mxu1 %v5818_v0 }
 0x5f2   :  { %5460 = vmatpush3.bf16.msra.mxu1 %v5800_v59 }
 0x5f3   :  { %5461 = vmatprep.subr.bf16.mxu1 %v5818_v0  ;;  %v4997_v0 = vld [vmem:[%s7413_s18] ss:$0 sm:$0xff] }
 0x5f6   :  { %5462 = vmatpush3.bf16.msra.mxu1 %v5801_v60 }
 0x677   :  { %v4358_v39 = vpop.xlane.xlu0 %4357 }
 0x678   :  { %v4362_v49 = vmul.f32 0.015625, %v4358_v39 }
 0x679   :  { %v4361_v50 = vpop.xlane.xlu1 %4360 }
 0x67a   :  { %v4364_v51 = vsub.f32 %v4352_v34, %v4362_v49  ;;  %v4363_v52 = vmul.f32 0.015625, %v4361_v50 }
 0x67c   :  { %v4365_v55 = vsub.f32 %v4353_v6, %v4363_v52  ;;  %v4366_v53 = vmul.f32 %v4364_v51, %v4364_v51 }
 0x67e   :  { %v4368_v54 = vsel %vm2039_vm1, %v4366_v53, 0.0  ;;  %v4367_v56 = vmul.f32 %v4365_v55, %v4365_v55 }
 0x67f   :  { %4369 = vadd.xlane.f32.xlu0 %v4368_v54 }
 0x680   :  { %v4371_v36 = vsel %vm2039_vm1, %v4367_v56, 0.0 }
 0x681   :  { %4372 = vadd.xlane.f32.xlu1 %v4371_v36 }
 0x70c   :  { %v4370_v7 = vpop.xlane.xlu0 %4369 }
 0x70d   :  { %v4374_v8 = vmul.f32 0.015625, %v4370_v7 }
 0x70e   :  { %v4373_v41 = vpop.xlane.xlu1 %4372 }
 0x70f   :  { %v4376_v40 = vadd.f32 1e-05, %v4374_v8  ;;  %v4375_v10 = vmul.f32 0.015625, %v4373_v41 }
 0x711   :  { %5814 = vrsqrt.f32 %v4376_v40  ;;  %v4377_v12 = vadd.f32 1e-05, %v4375_v10 }
 0x713   :  { %5816 = vrsqrt.f32 %v4377_v12 }
 0x71b   :  { %v5815_v13 = vpop.eup %5814 }
 0x71c   :  { %v4380_v11 = vmul.f32 %v5815_v13, %v4364_v51 }
 0x71d   :  { %v5817_v15 = vpop.eup %5816 }
 0x71e   :  { %v4388_v16 = vmul.f32 %v4989_v43, %v4380_v11  ;;  %v4381_v17 = vmul.f32 %v5817_v15, %v4365_v55 }
 0x720   :  { %v4389_v19 = vmul.f32 %v4989_v43, %v4381_v17  ;;  %v4396_v20 = vadd.f32 %v4990_v18, %v4388_v16 }
 0x722   :  { %v4397_v42 = vadd.f32 %v4990_v18, %v4389_v19 }
 0x724   :  { %v4398_v21 = vpack.c.bf16 %v4397_v42, %v4396_v20 }
 0x726   :  { %5464 = vmatmul.mubr.msk.bf16.vlgmr.msra.gmra.mrb[60].mxu1 %vm2039_vm1, %v4398_v21 }
 0x7f9   :  { %v4475_v62 = vpop.f32.mrb[60].mxu1 }
 0x7fa   :  { %v4476_v57 = vadd.f32 %v4991_v23, %v4475_v62  ;;  %v5465_v24 = vpop.f32.mrb[61].mxu1 }
 0x7fb   :  { %v4478_v25 = vpop.f32.mrb[62].mxu1 }
 0x7fc   :  { %v4479_v26 = vadd.f32 %v4991_v23, %v4478_v25  ;;  %v5466_v27 = vpop.f32.mrb[63].mxu1  ;;  %v4482_v28 = vmax.f32 %v4476_v57, 0.0 }
 0x7fe   :  { %v4483_v29 = vmax.f32 %v4479_v26, 0.0 }
 0x800   :  { %v4484_v30 = vpack.c.bf16 %v4483_v29, %v4482_v28 }
 0x802   :  { %5484 = vmatmul.mubr.bf16.vlgmr.msra.gmra.mrb[52].mxu0 %v4484_v30 }
 0x8d5   :  { %v4590_v32 = vpop.f32.mrb[52].mxu0 }
 0x8d6   :  { %v4591_v31 = vadd.f32 %v4997_v0, %v4590_v32  ;;  %v5485_v33 = vpop.f32.mrb[53].mxu0 }
 0x8d7   :  { %v4593_v9 = vpop.f32.mrb[54].mxu0 }
 0x8d8   :  { %4597 = vst [vmem:[%s7414_s19] sm:$0xff] %v4591_v31  ;;  %v4594_v1 = vadd.f32 %v4997_v0, %v4593_v9  ;;  %v5486_v37 = vpop.f32.mrb[55].mxu0 }
 0x8da   :  { %4598 = vst [vmem:[%s7414_s19 + $0x8] sm:$0xff] %v4594_v1 }

</bundles_post_ra>
